<compile_context>
chip_gen: v7x
topology: tpu7x:2x2x1
jax: 0.10.0
libtpu: 0.0.40
codegen_flags: <defaults>
</compile_context>

<pallas_src>
import functools

import jax
import jax.numpy as jnp
from jax.experimental import pallas as pl
from jax.experimental.pallas import tpu as pltpu


# --------------------- stride-1 fused im2col + matmul conv ------------------ #
def _conv_kernel(x_ref, w_ref, b_ref, o_ref, *, kh, kw, oh, ow):
    # x_ref: (1, H, W, C) bf16    w_ref: (KH, KW, C, O) bf16
    # b_ref: (1, O) f32           o_ref: (1, oh*ow, O) bf16
    x = x_ref[...]                       # whole image block into vregs (small)
    w = w_ref[...]
    c_out = o_ref.shape[-1]
    acc = jnp.zeros((oh * ow, c_out), jnp.float32)
    # Unit-stride patch extraction in VMEM; im2col never touches HBM.
    for i in range(kh):
        for j in range(kw):
            patch = x[0, i:i + oh, j:j + ow, :]          # (oh, ow, C) bf16
            patch = patch.reshape(oh * ow, patch.shape[-1])
            acc = acc + jnp.dot(patch, w[i, j],
                                preferred_element_type=jnp.float32)
    y = jnp.maximum(acc + b_ref[...], 0.0)               # bias + ReLU in f32
    o_ref[...] = y[None].astype(o_ref.dtype)


def conv2d_pallas(x_nhwc, w_kkco, b_1o):
    """NHWC valid-padding stride-1 conv + bias + ReLU, one image per grid step."""
    N, H, W, C = x_nhwc.shape
    KH, KW, C2, O = w_kkco.shape
    assert C == C2, (C, C2)
    oh = H - KH + 1
    ow = W - KW + 1
    kernel = functools.partial(_conv_kernel, kh=KH, kw=KW, oh=oh, ow=ow)
    out = pl.pallas_call(
        kernel,
        out_shape=jax.ShapeDtypeStruct((N, oh * ow, O), jnp.bfloat16),
        grid=(N,),
        in_specs=[
            pl.BlockSpec((1, H, W, C), lambda n: (n, 0, 0, 0)),
            pl.BlockSpec((KH, KW, C, O), lambda n: (0, 0, 0, 0)),
            pl.BlockSpec((1, O), lambda n: (0, 0)),
        ],
        out_specs=pl.BlockSpec((1, oh * ow, O), lambda n: (n, 0, 0)),
        compiler_params=pltpu.CompilerParams(
            dimension_semantics=("parallel",)),
    )(x_nhwc, w_kkco, b_1o)
    return out.reshape(N, oh, ow, O)


def space_to_depth(x_nhwc, s):
    """Fold a conv stride s into the channel dim (channel order = (di, dj, c))."""
    if s == 1:
        return x_nhwc
    N, H, W, C = x_nhwc.shape
    ph, pw = (-H) % s, (-W) % s
    if ph or pw:
        x_nhwc = jnp.pad(x_nhwc, ((0, 0), (0, ph), (0, pw), (0, 0)))
        H, W = H + ph, W + pw
    x = x_nhwc.reshape(N, H // s, s, W // s, s, C)
    x = x.transpose(0, 1, 3, 2, 4, 5)
    return x.reshape(N, H // s, W // s, s * s * C)


# ---------------------- fused fc1 + ReLU + fc2 head kernel ------------------ #
def _head_kernel(x_ref, w1_ref, b1_ref, w2_ref, b2_ref, o_ref):
    h = jnp.dot(x_ref[...], w1_ref[...], preferred_element_type=jnp.float32)
    h = jnp.maximum(h + b1_ref[...], 0.0).astype(jnp.bfloat16)
    q = jnp.dot(h, w2_ref[...], preferred_element_type=jnp.float32)
    o_ref[...] = q + b2_ref[...]


def mlp_head_pallas(x, w1, b1, w2, b2, *, block_m=512):
    B, F = x.shape
    _, Hd = w1.shape
    _, A = w2.shape
    tm = B if B <= block_m else block_m
    grid = (pl.cdiv(B, tm),)
    return pl.pallas_call(
        _head_kernel,
        out_shape=jax.ShapeDtypeStruct((B, A), jnp.float32),
        grid=grid,
        in_specs=[
            pl.BlockSpec((tm, F), lambda m: (m, 0)),
            pl.BlockSpec((F, Hd), lambda m: (0, 0)),
            pl.BlockSpec((1, Hd), lambda m: (0, 0)),
            pl.BlockSpec((Hd, A), lambda m: (0, 0)),
            pl.BlockSpec((1, A), lambda m: (0, 0)),
        ],
        out_specs=pl.BlockSpec((tm, A), lambda m: (m, 0)),
        compiler_params=pltpu.CompilerParams(
            dimension_semantics=("parallel",)),
    )(x, w1, b1, w2, b2)


# ------------------------------ parameters --------------------------------- #
def init_params(key, in_channels, n_actions, flat_size):
    """PyTorch-layout parameters (OIHW conv weights, (in,out) linear weights)."""
    ks = jax.random.split(key, 10)
    s = 0.05
    return {
        "w1": jax.random.normal(ks[0], (32, in_channels, 8, 8), jnp.float32) * s,
        "b1": jax.random.normal(ks[1], (32,), jnp.float32) * s,
        "w2": jax.random.normal(ks[2], (64, 32, 4, 4), jnp.float32) * s,
        "b2": jax.random.normal(ks[3], (64,), jnp.float32) * s,
        "w3": jax.random.normal(ks[4], (64, 64, 3, 3), jnp.float32) * s,
        "b3": jax.random.normal(ks[5], (64,), jnp.float32) * s,
        "wf1": jax.random.normal(ks[6], (flat_size, 512), jnp.float32) * s,
        "bf1": jax.random.normal(ks[7], (512,), jnp.float32) * s,
        "wf2": jax.random.normal(ks[8], (512, n_actions), jnp.float32) * s,
        "bf2": jax.random.normal(ks[9], (n_actions,), jnp.float32) * s,
    }


def prepare_params(params, input_shape):
    """One-time weight prep: layout + space-to-depth stride fold, 1/255 fold,
    NCHW-flatten permutation fold, bf16 cast."""
    _, H, W = input_shape
    o1, p1 = (H - 8) // 4 + 1, (W - 8) // 4 + 1
    o2, p2 = (o1 - 4) // 2 + 1, (p1 - 4) // 2 + 1
    o3, p3 = o2 - 3 + 1, p2 - 3 + 1

    def conv_w(w_oihw, s, scale=1.0):
        # OIHW -> (KH, KW, C, O), then fold stride s into channels.
        w = jnp.transpose(w_oihw, (2, 3, 1, 0)) * scale
        KH, KW, C, O = w.shape
        kbh, kbw = KH // s, KW // s
        w = w.reshape(kbh, s, kbw, s, C, O).transpose(0, 2, 1, 3, 4, 5)
        return w.reshape(kbh, kbw, s * s * C, O).astype(jnp.bfloat16)

    # Row permutation so NHWC-flatten @ wf1_perm == NCHW-flatten @ wf1.
    perm = jnp.arange(64 * o3 * p3).reshape(64, o3, p3).transpose(1, 2, 0).reshape(-1)

    return {
        "w1": conv_w(params["w1"], 4, 1.0 / 255.0),       # x/255 folded into w1
        "b1": params["b1"].reshape(1, -1).astype(jnp.float32),
        "w2": conv_w(params["w2"], 2),
        "b2": params["b2"].reshape(1, -1).astype(jnp.float32),
        "w3": conv_w(params["w3"], 1),
        "b3": params["b3"].reshape(1, -1).astype(jnp.float32),
        "wf1": params["wf1"][perm, :].astype(jnp.bfloat16),
        "bf1": params["bf1"].reshape(1, -1).astype(jnp.float32),
        "wf2": params["wf2"].astype(jnp.bfloat16),
        "bf2": params["bf2"].reshape(1, -1).astype(jnp.float32),
    }


# ------------------------------ forward pass -------------------------------- #
def dqn_forward(x_nchw, prep):
    n = x_nchw.shape[0]
    # NCHW -> NHWC (channels on the lane dim); raw 0..255 pixels are exact in
    # bf16 and the 1/255 normalization lives in w1.
    x = jnp.transpose(x_nchw, (0, 2, 3, 1)).astype(jnp.bfloat16)
    x = space_to_depth(x, 4)
    x = conv2d_pallas(x, prep["w1"], prep["b1"])          # conv1 (k8 s4)
    x = space_to_depth(x, 2)
    x = conv2d_pallas(x, prep["w2"], prep["b2"])          # conv2 (k4 s2)
    x = conv2d_pallas(x, prep["w3"], prep["b3"])          # conv3 (k3 s1)
    flat = x.reshape(n, -1)          # NHWC flatten; wf1 rows were pre-permuted
    return mlp_head_pallas(flat, prep["wf1"], prep["bf1"],
                           prep["wf2"], prep["bf2"])


# ------------------------------ pure-JAX reference -------------------------- #
def dqn_reference(x_nchw, params):
    x = x_nchw.astype(jnp.float32) / 255.0

    def conv(x, w, b, s):
        y = jax.lax.conv_general_dilated(
            x, w, (s, s), "VALID",
            dimension_numbers=("NCHW", "OIHW", "NCHW"))
        return jax.nn.relu(y + b.reshape(1, -1, 1, 1))

    x = conv(x, params["w1"], params["b1"], 4)
    x = conv(x, params["w2"], params["b2"], 2)
    x = conv(x, params["w3"], params["b3"], 1)
    flat = x.reshape(x.shape[0], -1)
    h = jax.nn.relu(flat @ params["wf1"] + params["bf1"])
    return h @ params["wf2"] + params["bf2"]


# --------------------------------- main ------------------------------------- #
if __name__ == "__main__":
    # Small-but-valid shapes: the conv stack (k8/s4, k4/s2, k3/s1) needs H,W
    # >= 36 for a valid output; 36x36 gives a 1x1x64 feature map (flat = 64).
    batch, in_channels, H, W = 2, 4, 36, 36
    n_actions = 6  # Pong

    o1 = (H - 8) // 4 + 1
    o2 = (o1 - 4) // 2 + 1
    o3 = o2 - 3 + 1
    flat_size = 64 * o3 * o3

    key = jax.random.PRNGKey(0)
    k_x, k_p = jax.random.split(key)
    # Integer-valued pixels (like real uint8 frames) -- exact in bf16.
    x = jax.random.randint(
        k_x, (batch, in_channels, H, W), 0, 256).astype(jnp.float32)
    params = init_params(k_p, in_channels, n_actions, flat_size)
    prep = prepare_params(params, (in_channels, H, W))

    fwd = jax.jit(dqn_forward)
    q_values = jax.block_until_ready(fwd(x, prep))
    assert q_values.shape == (batch, n_actions), q_values.shape
    assert q_values.dtype == jnp.float32

    # Loose tolerance vs the fp32 reference (kernel matmuls run in bf16).
    q_ref = dqn_reference(x, params)
    max_err = float(jnp.max(jnp.abs(q_values - q_ref)))
    tol = 3e-2 + 0.1 * float(jnp.max(jnp.abs(q_ref)))
    assert max_err < tol, (max_err, tol)

    print("KERNEL_OK")
</pallas_src>

<mosaic_0001>
module attributes {stable_mosaic.version = 11 : i64} {
  func.func @_conv_kernel(%arg0: i32, %arg1: memref<1x9x9x64xbf16, #tpu.memory_space<vmem>>, %arg2: memref<2x2x64x32xbf16, #tpu.memory_space<vmem>>, %arg3: memref<1x32xf32, #tpu.memory_space<vmem>>, %arg4: memref<1x64x32xbf16, #tpu.memory_space<vmem>>) attributes {dimension_semantics = [#tpu.dimension_semantics<parallel>], iteration_bounds = array<i64: 2>, scalar_prefetch = 0 : i64, scratch_operands = 0 : i64, tpu.core_type = #tpu.core_type<tc>, window_params = [{transform_indices = @transform_0, window_bounds = array<i64: 1, 9, 9, 64>}, {pipeline_mode = #tpu.pipeline_mode<synchronous>, transform_indices = @transform_1, window_bounds = array<i64: 2, 2, 64, 32>}, {pipeline_mode = #tpu.pipeline_mode<synchronous>, transform_indices = @transform_2, window_bounds = array<i64: 1, 32>}, {transform_indices = @transform_3, window_bounds = array<i64: 1, 64, 32>}]} {
    %c0 = arith.constant 0 : index
    %c0_0 = arith.constant 0 : index
    %c0_1 = arith.constant 0 : index
    %c0_2 = arith.constant 0 : index
    %0 = vector.load %arg1[%c0, %c0_0, %c0_1, %c0_2] : memref<1x9x9x64xbf16, #tpu.memory_space<vmem>>, vector<1x9x9x64xbf16>
    %c0_3 = arith.constant 0 : index
    %c0_4 = arith.constant 0 : index
    %c0_5 = arith.constant 0 : index
    %c0_6 = arith.constant 0 : index
    %1 = vector.load %arg2[%c0_3, %c0_4, %c0_5, %c0_6] : memref<2x2x64x32xbf16, #tpu.memory_space<vmem>>, vector<2x2x64x32xbf16>
    %cst = arith.constant 0.000000e+00 : f32
    %2 = vector.broadcast %cst : f32 to vector<64x32xf32>
    %3 = vector.extract_strided_slice %0 {offsets = [0, 0, 0, 0], sizes = [1, 8, 8, 64], strides = [1, 1, 1, 1]} : vector<1x9x9x64xbf16> to vector<1x8x8x64xbf16>
    %4 = vector.shape_cast %3 : vector<1x8x8x64xbf16> to vector<8x8x64xbf16>
    %5 = vector.shape_cast %4 : vector<8x8x64xbf16> to vector<64x64xbf16>
    %6 = vector.extract_strided_slice %1 {offsets = [0, 0, 0, 0], sizes = [1, 1, 64, 32], strides = [1, 1, 1, 1]} : vector<2x2x64x32xbf16> to vector<1x1x64x32xbf16>
    %7 = vector.shape_cast %6 : vector<1x1x64x32xbf16> to vector<64x32xbf16>
    %cst_7 = arith.constant dense<0.000000e+00> : vector<64x32xf32>
    %8 = tpu.matmul %5, %7, %cst_7 {dimension_numbers = #tpu.dot_dimension_numbers<[1], [0], [0], [1], [0, 0, 1, 1], [], []>} : vector<64x64xbf16>, vector<64x32xbf16>, vector<64x32xf32> -> vector<64x32xf32>
    %9 = arith.addf %2, %8 : vector<64x32xf32>
    %10 = vector.extract_strided_slice %0 {offsets = [0, 0, 1, 0], sizes = [1, 8, 8, 64], strides = [1, 1, 1, 1]} : vector<1x9x9x64xbf16> to vector<1x8x8x64xbf16>
    %11 = vector.shape_cast %10 : vector<1x8x8x64xbf16> to vector<8x8x64xbf16>
    %12 = vector.shape_cast %11 : vector<8x8x64xbf16> to vector<64x64xbf16>
    %13 = vector.extract_strided_slice %1 {offsets = [0, 1, 0, 0], sizes = [1, 1, 64, 32], strides = [1, 1, 1, 1]} : vector<2x2x64x32xbf16> to vector<1x1x64x32xbf16>
    %14 = vector.shape_cast %13 : vector<1x1x64x32xbf16> to vector<64x32xbf16>
    %cst_8 = arith.constant dense<0.000000e+00> : vector<64x32xf32>
    %15 = tpu.matmul %12, %14, %cst_8 {dimension_numbers = #tpu.dot_dimension_numbers<[1], [0], [0], [1], [0, 0, 1, 1], [], []>} : vector<64x64xbf16>, vector<64x32xbf16>, vector<64x32xf32> -> vector<64x32xf32>
    %16 = arith.addf %9, %15 : vector<64x32xf32>
    %17 = vector.extract_strided_slice %0 {offsets = [0, 1, 0, 0], sizes = [1, 8, 8, 64], strides = [1, 1, 1, 1]} : vector<1x9x9x64xbf16> to vector<1x8x8x64xbf16>
    %18 = vector.shape_cast %17 : vector<1x8x8x64xbf16> to vector<8x8x64xbf16>
    %19 = vector.shape_cast %18 : vector<8x8x64xbf16> to vector<64x64xbf16>
    %20 = vector.extract_strided_slice %1 {offsets = [1, 0, 0, 0], sizes = [1, 1, 64, 32], strides = [1, 1, 1, 1]} : vector<2x2x64x32xbf16> to vector<1x1x64x32xbf16>
    %21 = vector.shape_cast %20 : vector<1x1x64x32xbf16> to vector<64x32xbf16>
    %cst_9 = arith.constant dense<0.000000e+00> : vector<64x32xf32>
    %22 = tpu.matmul %19, %21, %cst_9 {dimension_numbers = #tpu.dot_dimension_numbers<[1], [0], [0], [1], [0, 0, 1, 1], [], []>} : vector<64x64xbf16>, vector<64x32xbf16>, vector<64x32xf32> -> vector<64x32xf32>
    %23 = arith.addf %16, %22 : vector<64x32xf32>
    %24 = vector.extract_strided_slice %0 {offsets = [0, 1, 1, 0], sizes = [1, 8, 8, 64], strides = [1, 1, 1, 1]} : vector<1x9x9x64xbf16> to vector<1x8x8x64xbf16>
    %25 = vector.shape_cast %24 : vector<1x8x8x64xbf16> to vector<8x8x64xbf16>
    %26 = vector.shape_cast %25 : vector<8x8x64xbf16> to vector<64x64xbf16>
    %27 = vector.extract_strided_slice %1 {offsets = [1, 1, 0, 0], sizes = [1, 1, 64, 32], strides = [1, 1, 1, 1]} : vector<2x2x64x32xbf16> to vector<1x1x64x32xbf16>
    %28 = vector.shape_cast %27 : vector<1x1x64x32xbf16> to vector<64x32xbf16>
    %cst_10 = arith.constant dense<0.000000e+00> : vector<64x32xf32>
    %29 = tpu.matmul %26, %28, %cst_10 {dimension_numbers = #tpu.dot_dimension_numbers<[1], [0], [0], [1], [0, 0, 1, 1], [], []>} : vector<64x64xbf16>, vector<64x32xbf16>, vector<64x32xf32> -> vector<64x32xf32>
    %30 = arith.addf %23, %29 : vector<64x32xf32>
    %c0_11 = arith.constant 0 : index
    %c0_12 = arith.constant 0 : index
    %31 = vector.load %arg3[%c0_11, %c0_12] : memref<1x32xf32, #tpu.memory_space<vmem>>, vector<1x32xf32>
    %32 = vector.broadcast %31 : vector<1x32xf32> to vector<64x32xf32>
    %33 = arith.addf %30, %32 : vector<64x32xf32>
    %cst_13 = arith.constant 0.000000e+00 : f32
    %34 = vector.broadcast %cst_13 : f32 to vector<64x32xf32>
    %35 = arith.maximumf %33, %34 : vector<64x32xf32>
    %36 = vector.shape_cast %35 : vector<64x32xf32> to vector<1x64x32xf32>
    %37 = arith.truncf %36 : vector<1x64x32xf32> to vector<1x64x32xbf16>
    %c0_14 = arith.constant 0 : index
    %c0_15 = arith.constant 0 : index
    %c0_16 = arith.constant 0 : index
    %38 = vector.load %arg4[%c0_14, %c0_15, %c0_16] : memref<1x64x32xbf16, #tpu.memory_space<vmem>>, vector<1x64x32xbf16>
    tpu.vector_store %arg4[%c0_14, %c0_15, %c0_16], %37 {strides = array<i32>} : memref<1x64x32xbf16, #tpu.memory_space<vmem>>, vector<1x64x32xbf16>,
    return
  }
  func.func @transform_0(%arg0: i32) -> (i32, i32, i32, i32) {
    %c0_i32 = arith.constant 0 : i32
    %c0_i32_0 = arith.constant 0 : i32
    %c0_i32_1 = arith.constant 0 : i32
    %c0_i32_2 = arith.constant 0 : i32
    return %arg0, %c0_i32, %c0_i32_0, %c0_i32_1 : i32, i32, i32, i32
  }
  func.func @transform_1(%arg0: i32) -> (i32, i32, i32, i32) {
    %c0_i32 = arith.constant 0 : i32
    %c0_i32_0 = arith.constant 0 : i32
    %c0_i32_1 = arith.constant 0 : i32
    %c0_i32_2 = arith.constant 0 : i32
    %c0_i32_3 = arith.constant 0 : i32
    return %c0_i32, %c0_i32_0, %c0_i32_1, %c0_i32_2 : i32, i32, i32, i32
  }
  func.func @transform_2(%arg0: i32) -> (i32, i32) {
    %c0_i32 = arith.constant 0 : i32
    %c0_i32_0 = arith.constant 0 : i32
    %c0_i32_1 = arith.constant 0 : i32
    return %c0_i32, %c0_i32_0 : i32, i32
  }
  func.func @transform_3(%arg0: i32) -> (i32, i32, i32) {
    %c0_i32 = arith.constant 0 : i32
    %c0_i32_0 = arith.constant 0 : i32
    %c0_i32_1 = arith.constant 0 : i32
    return %arg0, %c0_i32, %c0_i32_0 : i32, i32, i32
  }
}

module attributes {stable_mosaic.version = 11 : i64} {
  func.func @_conv_kernel(%arg0: i32, %arg1: memref<1x4x4x128xbf16, #tpu.memory_space<vmem>>, %arg2: memref<2x2x128x64xbf16, #tpu.memory_space<vmem>>, %arg3: memref<1x64xf32, #tpu.memory_space<vmem>>, %arg4: memref<1x9x64xbf16, #tpu.memory_space<vmem>>) attributes {dimension_semantics = [#tpu.dimension_semantics<parallel>], iteration_bounds = array<i64: 2>, scalar_prefetch = 0 : i64, scratch_operands = 0 : i64, tpu.core_type = #tpu.core_type<tc>, window_params = [{transform_indices = @transform_0, window_bounds = array<i64: 1, 4, 4, 128>}, {pipeline_mode = #tpu.pipeline_mode<synchronous>, transform_indices = @transform_1, window_bounds = array<i64: 2, 2, 128, 64>}, {pipeline_mode = #tpu.pipeline_mode<synchronous>, transform_indices = @transform_2, window_bounds = array<i64: 1, 64>}, {transform_indices = @transform_3, window_bounds = array<i64: 1, 9, 64>}]} {
    %c0 = arith.constant 0 : index
    %c0_0 = arith.constant 0 : index
    %c0_1 = arith.constant 0 : index
    %c0_2 = arith.constant 0 : index
    %0 = vector.load %arg1[%c0, %c0_0, %c0_1, %c0_2] : memref<1x4x4x128xbf16, #tpu.memory_space<vmem>>, vector<1x4x4x128xbf16>
    %c0_3 = arith.constant 0 : index
    %c0_4 = arith.constant 0 : index
    %c0_5 = arith.constant 0 : index
    %c0_6 = arith.constant 0 : index
    %1 = vector.load %arg2[%c0_3, %c0_4, %c0_5, %c0_6] : memref<2x2x128x64xbf16, #tpu.memory_space<vmem>>, vector<2x2x128x64xbf16>
    %cst = arith.constant 0.000000e+00 : f32
    %2 = vector.broadcast %cst : f32 to vector<9x64xf32>
    %3 = vector.extract_strided_slice %0 {offsets = [0, 0, 0, 0], sizes = [1, 3, 3, 128], strides = [1, 1, 1, 1]} : vector<1x4x4x128xbf16> to vector<1x3x3x128xbf16>
    %4 = vector.shape_cast %3 : vector<1x3x3x128xbf16> to vector<3x3x128xbf16>
    %5 = vector.shape_cast %4 : vector<3x3x128xbf16> to vector<9x128xbf16>
    %6 = vector.extract_strided_slice %1 {offsets = [0, 0, 0, 0], sizes = [1, 1, 128, 64], strides = [1, 1, 1, 1]} : vector<2x2x128x64xbf16> to vector<1x1x128x64xbf16>
    %7 = vector.shape_cast %6 : vector<1x1x128x64xbf16> to vector<128x64xbf16>
    %cst_7 = arith.constant dense<0.000000e+00> : vector<9x64xf32>
    %8 = tpu.matmul %5, %7, %cst_7 {dimension_numbers = #tpu.dot_dimension_numbers<[1], [0], [0], [1], [0, 0, 1, 1], [], []>} : vector<9x128xbf16>, vector<128x64xbf16>, vector<9x64xf32> -> vector<9x64xf32>
    %9 = arith.addf %2, %8 : vector<9x64xf32>
    %10 = vector.extract_strided_slice %0 {offsets = [0, 0, 1, 0], sizes = [1, 3, 3, 128], strides = [1, 1, 1, 1]} : vector<1x4x4x128xbf16> to vector<1x3x3x128xbf16>
    %11 = vector.shape_cast %10 : vector<1x3x3x128xbf16> to vector<3x3x128xbf16>
    %12 = vector.shape_cast %11 : vector<3x3x128xbf16> to vector<9x128xbf16>
    %13 = vector.extract_strided_slice %1 {offsets = [0, 1, 0, 0], sizes = [1, 1, 128, 64], strides = [1, 1, 1, 1]} : vector<2x2x128x64xbf16> to vector<1x1x128x64xbf16>
    %14 = vector.shape_cast %13 : vector<1x1x128x64xbf16> to vector<128x64xbf16>
    %cst_8 = arith.constant dense<0.000000e+00> : vector<9x64xf32>
    %15 = tpu.matmul %12, %14, %cst_8 {dimension_numbers = #tpu.dot_dimension_numbers<[1], [0], [0], [1], [0, 0, 1, 1], [], []>} : vector<9x128xbf16>, vector<128x64xbf16>, vector<9x64xf32> -> vector<9x64xf32>
    %16 = arith.addf %9, %15 : vector<9x64xf32>
    %17 = vector.extract_strided_slice %0 {offsets = [0, 1, 0, 0], sizes = [1, 3, 3, 128], strides = [1, 1, 1, 1]} : vector<1x4x4x128xbf16> to vector<1x3x3x128xbf16>
    %18 = vector.shape_cast %17 : vector<1x3x3x128xbf16> to vector<3x3x128xbf16>
    %19 = vector.shape_cast %18 : vector<3x3x128xbf16> to vector<9x128xbf16>
    %20 = vector.extract_strided_slice %1 {offsets = [1, 0, 0, 0], sizes = [1, 1, 128, 64], strides = [1, 1, 1, 1]} : vector<2x2x128x64xbf16> to vector<1x1x128x64xbf16>
    %21 = vector.shape_cast %20 : vector<1x1x128x64xbf16> to vector<128x64xbf16>
    %cst_9 = arith.constant dense<0.000000e+00> : vector<9x64xf32>
    %22 = tpu.matmul %19, %21, %cst_9 {dimension_numbers = #tpu.dot_dimension_numbers<[1], [0], [0], [1], [0, 0, 1, 1], [], []>} : vector<9x128xbf16>, vector<128x64xbf16>, vector<9x64xf32> -> vector<9x64xf32>
    %23 = arith.addf %16, %22 : vector<9x64xf32>
    %24 = vector.extract_strided_slice %0 {offsets = [0, 1, 1, 0], sizes = [1, 3, 3, 128], strides = [1, 1, 1, 1]} : vector<1x4x4x128xbf16> to vector<1x3x3x128xbf16>
    %25 = vector.shape_cast %24 : vector<1x3x3x128xbf16> to vector<3x3x128xbf16>
    %26 = vector.shape_cast %25 : vector<3x3x128xbf16> to vector<9x128xbf16>
    %27 = vector.extract_strided_slice %1 {offsets = [1, 1, 0, 0], sizes = [1, 1, 128, 64], strides = [1, 1, 1, 1]} : vector<2x2x128x64xbf16> to vector<1x1x128x64xbf16>
    %28 = vector.shape_cast %27 : vector<1x1x128x64xbf16> to vector<128x64xbf16>
    %cst_10 = arith.constant dense<0.000000e+00> : vector<9x64xf32>
    %29 = tpu.matmul %26, %28, %cst_10 {dimension_numbers = #tpu.dot_dimension_numbers<[1], [0], [0], [1], [0, 0, 1, 1], [], []>} : vector<9x128xbf16>, vector<128x64xbf16>, vector<9x64xf32> -> vector<9x64xf32>
    %30 = arith.addf %23, %29 : vector<9x64xf32>
    %c0_11 = arith.constant 0 : index
    %c0_12 = arith.constant 0 : index
    %31 = vector.load %arg3[%c0_11, %c0_12] : memref<1x64xf32, #tpu.memory_space<vmem>>, vector<1x64xf32>
    %32 = vector.broadcast %31 : vector<1x64xf32> to vector<9x64xf32>
    %33 = arith.addf %30, %32 : vector<9x64xf32>
    %cst_13 = arith.constant 0.000000e+00 : f32
    %34 = vector.broadcast %cst_13 : f32 to vector<9x64xf32>
    %35 = arith.maximumf %33, %34 : vector<9x64xf32>
    %36 = vector.shape_cast %35 : vector<9x64xf32> to vector<1x9x64xf32>
    %37 = arith.truncf %36 : vector<1x9x64xf32> to vector<1x9x64xbf16>
    %c0_14 = arith.constant 0 : index
    %c0_15 = arith.constant 0 : index
    %c0_16 = arith.constant 0 : index
    %38 = vector.load %arg4[%c0_14, %c0_15, %c0_16] : memref<1x9x64xbf16, #tpu.memory_space<vmem>>, vector<1x9x64xbf16>
    tpu.vector_store %arg4[%c0_14, %c0_15, %c0_16], %37 {strides = array<i32>} : memref<1x9x64xbf16, #tpu.memory_space<vmem>>, vector<1x9x64xbf16>,
    return
  }
  func.func @transform_0(%arg0: i32) -> (i32, i32, i32, i32) {
    %c0_i32 = arith.constant 0 : i32
    %c0_i32_0 = arith.constant 0 : i32
    %c0_i32_1 = arith.constant 0 : i32
    %c0_i32_2 = arith.constant 0 : i32
    return %arg0, %c0_i32, %c0_i32_0, %c0_i32_1 : i32, i32, i32, i32
  }
  func.func @transform_1(%arg0: i32) -> (i32, i32, i32, i32) {
    %c0_i32 = arith.constant 0 : i32
    %c0_i32_0 = arith.constant 0 : i32
    %c0_i32_1 = arith.constant 0 : i32
    %c0_i32_2 = arith.constant 0 : i32
    %c0_i32_3 = arith.constant 0 : i32
    return %c0_i32, %c0_i32_0, %c0_i32_1, %c0_i32_2 : i32, i32, i32, i32
  }
  func.func @transform_2(%arg0: i32) -> (i32, i32) {
    %c0_i32 = arith.constant 0 : i32
    %c0_i32_0 = arith.constant 0 : i32
    %c0_i32_1 = arith.constant 0 : i32
    return %c0_i32, %c0_i32_0 : i32, i32
  }
  func.func @transform_3(%arg0: i32) -> (i32, i32, i32) {
    %c0_i32 = arith.constant 0 : i32
    %c0_i32_0 = arith.constant 0 : i32
    %c0_i32_1 = arith.constant 0 : i32
    return %arg0, %c0_i32, %c0_i32_0 : i32, i32, i32
  }
}

module attributes {stable_mosaic.version = 11 : i64} {
  func.func @_conv_kernel(%arg0: i32, %arg1: memref<1x3x3x64xbf16, #tpu.memory_space<vmem>>, %arg2: memref<3x3x64x64xbf16, #tpu.memory_space<vmem>>, %arg3: memref<1x64xf32, #tpu.memory_space<vmem>>, %arg4: memref<1x1x64xbf16, #tpu.memory_space<vmem>>) attributes {dimension_semantics = [#tpu.dimension_semantics<parallel>], iteration_bounds = array<i64: 2>, scalar_prefetch = 0 : i64, scratch_operands = 0 : i64, tpu.core_type = #tpu.core_type<tc>, window_params = [{transform_indices = @transform_0, window_bounds = array<i64: 1, 3, 3, 64>}, {pipeline_mode = #tpu.pipeline_mode<synchronous>, transform_indices = @transform_1, window_bounds = array<i64: 3, 3, 64, 64>}, {pipeline_mode = #tpu.pipeline_mode<synchronous>, transform_indices = @transform_2, window_bounds = array<i64: 1, 64>}, {transform_indices = @transform_3, window_bounds = array<i64: 1, 1, 64>}]} {
    %c0 = arith.constant 0 : index
    %c0_0 = arith.constant 0 : index
    %c0_1 = arith.constant 0 : index
    %c0_2 = arith.constant 0 : index
    %0 = vector.load %arg1[%c0, %c0_0, %c0_1, %c0_2] : memref<1x3x3x64xbf16, #tpu.memory_space<vmem>>, vector<1x3x3x64xbf16>
    %c0_3 = arith.constant 0 : index
    %c0_4 = arith.constant 0 : index
    %c0_5 = arith.constant 0 : index
    %c0_6 = arith.constant 0 : index
    %1 = vector.load %arg2[%c0_3, %c0_4, %c0_5, %c0_6] : memref<3x3x64x64xbf16, #tpu.memory_space<vmem>>, vector<3x3x64x64xbf16>
    %cst = arith.constant 0.000000e+00 : f32
    %2 = vector.broadcast %cst : f32 to vector<1x64xf32>
    %3 = vector.extract_strided_slice %0 {offsets = [0, 0, 0, 0], sizes = [1, 1, 1, 64], strides = [1, 1, 1, 1]} : vector<1x3x3x64xbf16> to vector<1x1x1x64xbf16>
    %4 = vector.shape_cast %3 : vector<1x1x1x64xbf16> to vector<1x1x64xbf16>
    %5 = vector.shape_cast %4 : vector<1x1x64xbf16> to vector<1x64xbf16>
    %6 = vector.extract_strided_slice %1 {offsets = [0, 0, 0, 0], sizes = [1, 1, 64, 64], strides = [1, 1, 1, 1]} : vector<3x3x64x64xbf16> to vector<1x1x64x64xbf16>
    %7 = vector.shape_cast %6 : vector<1x1x64x64xbf16> to vector<64x64xbf16>
    %cst_7 = arith.constant dense<0.000000e+00> : vector<1x64xf32>
    %8 = tpu.matmul %5, %7, %cst_7 {dimension_numbers = #tpu.dot_dimension_numbers<[1], [0], [0], [1], [0, 0, 1, 1], [], []>} : vector<1x64xbf16>, vector<64x64xbf16>, vector<1x64xf32> -> vector<1x64xf32>
    %9 = arith.addf %2, %8 : vector<1x64xf32>
    %10 = vector.extract_strided_slice %0 {offsets = [0, 0, 1, 0], sizes = [1, 1, 1, 64], strides = [1, 1, 1, 1]} : vector<1x3x3x64xbf16> to vector<1x1x1x64xbf16>
    %11 = vector.shape_cast %10 : vector<1x1x1x64xbf16> to vector<1x1x64xbf16>
    %12 = vector.shape_cast %11 : vector<1x1x64xbf16> to vector<1x64xbf16>
    %13 = vector.extract_strided_slice %1 {offsets = [0, 1, 0, 0], sizes = [1, 1, 64, 64], strides = [1, 1, 1, 1]} : vector<3x3x64x64xbf16> to vector<1x1x64x64xbf16>
    %14 = vector.shape_cast %13 : vector<1x1x64x64xbf16> to vector<64x64xbf16>
    %cst_8 = arith.constant dense<0.000000e+00> : vector<1x64xf32>
    %15 = tpu.matmul %12, %14, %cst_8 {dimension_numbers = #tpu.dot_dimension_numbers<[1], [0], [0], [1], [0, 0, 1, 1], [], []>} : vector<1x64xbf16>, vector<64x64xbf16>, vector<1x64xf32> -> vector<1x64xf32>
    %16 = arith.addf %9, %15 : vector<1x64xf32>
    %17 = vector.extract_strided_slice %0 {offsets = [0, 0, 2, 0], sizes = [1, 1, 1, 64], strides = [1, 1, 1, 1]} : vector<1x3x3x64xbf16> to vector<1x1x1x64xbf16>
    %18 = vector.shape_cast %17 : vector<1x1x1x64xbf16> to vector<1x1x64xbf16>
    %19 = vector.shape_cast %18 : vector<1x1x64xbf16> to vector<1x64xbf16>
    %20 = vector.extract_strided_slice %1 {offsets = [0, 2, 0, 0], sizes = [1, 1, 64, 64], strides = [1, 1, 1, 1]} : vector<3x3x64x64xbf16> to vector<1x1x64x64xbf16>
    %21 = vector.shape_cast %20 : vector<1x1x64x64xbf16> to vector<64x64xbf16>
    %cst_9 = arith.constant dense<0.000000e+00> : vector<1x64xf32>
    %22 = tpu.matmul %19, %21, %cst_9 {dimension_numbers = #tpu.dot_dimension_numbers<[1], [0], [0], [1], [0, 0, 1, 1], [], []>} : vector<1x64xbf16>, vector<64x64xbf16>, vector<1x64xf32> -> vector<1x64xf32>
    %23 = arith.addf %16, %22 : vector<1x64xf32>
    %24 = vector.extract_strided_slice %0 {offsets = [0, 1, 0, 0], sizes = [1, 1, 1, 64], strides = [1, 1, 1, 1]} : vector<1x3x3x64xbf16> to vector<1x1x1x64xbf16>
    %25 = vector.shape_cast %24 : vector<1x1x1x64xbf16> to vector<1x1x64xbf16>
    %26 = vector.shape_cast %25 : vector<1x1x64xbf16> to vector<1x64xbf16>
    %27 = vector.extract_strided_slice %1 {offsets = [1, 0, 0, 0], sizes = [1, 1, 64, 64], strides = [1, 1, 1, 1]} : vector<3x3x64x64xbf16> to vector<1x1x64x64xbf16>
    %28 = vector.shape_cast %27 : vector<1x1x64x64xbf16> to vector<64x64xbf16>
    %cst_10 = arith.constant dense<0.000000e+00> : vector<1x64xf32>
    %29 = tpu.matmul %26, %28, %cst_10 {dimension_numbers = #tpu.dot_dimension_numbers<[1], [0], [0], [1], [0, 0, 1, 1], [], []>} : vector<1x64xbf16>, vector<64x64xbf16>, vector<1x64xf32> -> vector<1x64xf32>
    %30 = arith.addf %23, %29 : vector<1x64xf32>
    %31 = vector.extract_strided_slice %0 {offsets = [0, 1, 1, 0], sizes = [1, 1, 1, 64], strides = [1, 1, 1, 1]} : vector<1x3x3x64xbf16> to vector<1x1x1x64xbf16>
    %32 = vector.shape_cast %31 : vector<1x1x1x64xbf16> to vector<1x1x64xbf16>
    %33 = vector.shape_cast %32 : vector<1x1x64xbf16> to vector<1x64xbf16>
    %34 = vector.extract_strided_slice %1 {offsets = [1, 1, 0, 0], sizes = [1, 1, 64, 64], strides = [1, 1, 1, 1]} : vector<3x3x64x64xbf16> to vector<1x1x64x64xbf16>
    %35 = vector.shape_cast %34 : vector<1x1x64x64xbf16> to vector<64x64xbf16>
    %cst_11 = arith.constant dense<0.000000e+00> : vector<1x64xf32>
    %36 = tpu.matmul %33, %35, %cst_11 {dimension_numbers = #tpu.dot_dimension_numbers<[1], [0], [0], [1], [0, 0, 1, 1], [], []>} : vector<1x64xbf16>, vector<64x64xbf16>, vector<1x64xf32> -> vector<1x64xf32>
    %37 = arith.addf %30, %36 : vector<1x64xf32>
    %38 = vector.extract_strided_slice %0 {offsets = [0, 1, 2, 0], sizes = [1, 1, 1, 64], strides = [1, 1, 1, 1]} : vector<1x3x3x64xbf16> to vector<1x1x1x64xbf16>
    %39 = vector.shape_cast %38 : vector<1x1x1x64xbf16> to vector<1x1x64xbf16>
    %40 = vector.shape_cast %39 : vector<1x1x64xbf16> to vector<1x64xbf16>
    %41 = vector.extract_strided_slice %1 {offsets = [1, 2, 0, 0], sizes = [1, 1, 64, 64], strides = [1, 1, 1, 1]} : vector<3x3x64x64xbf16> to vector<1x1x64x64xbf16>
    %42 = vector.shape_cast %41 : vector<1x1x64x64xbf16> to vector<64x64xbf16>
    %cst_12 = arith.constant dense<0.000000e+00> : vector<1x64xf32>
    %43 = tpu.matmul %40, %42, %cst_12 {dimension_numbers = #tpu.dot_dimension_numbers<[1], [0], [0], [1], [0, 0, 1, 1], [], []>} : vector<1x64xbf16>, vector<64x64xbf16>, vector<1x64xf32> -> vector<1x64xf32>
    %44 = arith.addf %37, %43 : vector<1x64xf32>
    %45 = vector.extract_strided_slice %0 {offsets = [0, 2, 0, 0], sizes = [1, 1, 1, 64], strides = [1, 1, 1, 1]} : vector<1x3x3x64xbf16> to vector<1x1x1x64xbf16>
    %46 = vector.shape_cast %45 : vector<1x1x1x64xbf16> to vector<1x1x64xbf16>
    %47 = vector.shape_cast %46 : vector<1x1x64xbf16> to vector<1x64xbf16>
    %48 = vector.extract_strided_slice %1 {offsets = [2, 0, 0, 0], sizes = [1, 1, 64, 64], strides = [1, 1, 1, 1]} : vector<3x3x64x64xbf16> to vector<1x1x64x64xbf16>
    %49 = vector.shape_cast %48 : vector<1x1x64x64xbf16> to vector<64x64xbf16>
    %cst_13 = arith.constant dense<0.000000e+00> : vector<1x64xf32>
    %50 = tpu.matmul %47, %49, %cst_13 {dimension_numbers = #tpu.dot_dimension_numbers<[1], [0], [0], [1], [0, 0, 1, 1], [], []>} : vector<1x64xbf16>, vector<64x64xbf16>, vector<1x64xf32> -> vector<1x64xf32>
    %51 = arith.addf %44, %50 : vector<1x64xf32>
    %52 = vector.extract_strided_slice %0 {offsets = [0, 2, 1, 0], sizes = [1, 1, 1, 64], strides = [1, 1, 1, 1]} : vector<1x3x3x64xbf16> to vector<1x1x1x64xbf16>
    %53 = vector.shape_cast %52 : vector<1x1x1x64xbf16> to vector<1x1x64xbf16>
    %54 = vector.shape_cast %53 : vector<1x1x64xbf16> to vector<1x64xbf16>
    %55 = vector.extract_strided_slice %1 {offsets = [2, 1, 0, 0], sizes = [1, 1, 64, 64], strides = [1, 1, 1, 1]} : vector<3x3x64x64xbf16> to vector<1x1x64x64xbf16>
    %56 = vector.shape_cast %55 : vector<1x1x64x64xbf16> to vector<64x64xbf16>
    %cst_14 = arith.constant dense<0.000000e+00> : vector<1x64xf32>
    %57 = tpu.matmul %54, %56, %cst_14 {dimension_numbers = #tpu.dot_dimension_numbers<[1], [0], [0], [1], [0, 0, 1, 1], [], []>} : vector<1x64xbf16>, vector<64x64xbf16>, vector<1x64xf32> -> vector<1x64xf32>
    %58 = arith.addf %51, %57 : vector<1x64xf32>
    %59 = vector.extract_strided_slice %0 {offsets = [0, 2, 2, 0], sizes = [1, 1, 1, 64], strides = [1, 1, 1, 1]} : vector<1x3x3x64xbf16> to vector<1x1x1x64xbf16>
    %60 = vector.shape_cast %59 : vector<1x1x1x64xbf16> to vector<1x1x64xbf16>
    %61 = vector.shape_cast %60 : vector<1x1x64xbf16> to vector<1x64xbf16>
    %62 = vector.extract_strided_slice %1 {offsets = [2, 2, 0, 0], sizes = [1, 1, 64, 64], strides = [1, 1, 1, 1]} : vector<3x3x64x64xbf16> to vector<1x1x64x64xbf16>
    %63 = vector.shape_cast %62 : vector<1x1x64x64xbf16> to vector<64x64xbf16>
    %cst_15 = arith.constant dense<0.000000e+00> : vector<1x64xf32>
    %64 = tpu.matmul %61, %63, %cst_15 {dimension_numbers = #tpu.dot_dimension_numbers<[1], [0], [0], [1], [0, 0, 1, 1], [], []>} : vector<1x64xbf16>, vector<64x64xbf16>, vector<1x64xf32> -> vector<1x64xf32>
    %65 = arith.addf %58, %64 : vector<1x64xf32>
    %c0_16 = arith.constant 0 : index
    %c0_17 = arith.constant 0 : index
    %66 = vector.load %arg3[%c0_16, %c0_17] : memref<1x64xf32, #tpu.memory_space<vmem>>, vector<1x64xf32>
    %67 = arith.addf %65, %66 : vector<1x64xf32>
    %cst_18 = arith.constant 0.000000e+00 : f32
    %68 = vector.broadcast %cst_18 : f32 to vector<1x64xf32>
    %69 = arith.maximumf %67, %68 : vector<1x64xf32>
    %70 = vector.shape_cast %69 : vector<1x64xf32> to vector<1x1x64xf32>
    %71 = arith.truncf %70 : vector<1x1x64xf32> to vector<1x1x64xbf16>
    %c0_19 = arith.constant 0 : index
    %c0_20 = arith.constant 0 : index
    %c0_21 = arith.constant 0 : index
    %72 = vector.load %arg4[%c0_19, %c0_20, %c0_21] : memref<1x1x64xbf16, #tpu.memory_space<vmem>>, vector<1x1x64xbf16>
    tpu.vector_store %arg4[%c0_19, %c0_20, %c0_21], %71 {strides = array<i32>} : memref<1x1x64xbf16, #tpu.memory_space<vmem>>, vector<1x1x64xbf16>,
    return
  }
  func.func @transform_0(%arg0: i32) -> (i32, i32, i32, i32) {
    %c0_i32 = arith.constant 0 : i32
    %c0_i32_0 = arith.constant 0 : i32
    %c0_i32_1 = arith.constant 0 : i32
    %c0_i32_2 = arith.constant 0 : i32
    return %arg0, %c0_i32, %c0_i32_0, %c0_i32_1 : i32, i32, i32, i32
  }
  func.func @transform_1(%arg0: i32) -> (i32, i32, i32, i32) {
    %c0_i32 = arith.constant 0 : i32
    %c0_i32_0 = arith.constant 0 : i32
    %c0_i32_1 = arith.constant 0 : i32
    %c0_i32_2 = arith.constant 0 : i32
    %c0_i32_3 = arith.constant 0 : i32
    return %c0_i32, %c0_i32_0, %c0_i32_1, %c0_i32_2 : i32, i32, i32, i32
  }
  func.func @transform_2(%arg0: i32) -> (i32, i32) {
    %c0_i32 = arith.constant 0 : i32
    %c0_i32_0 = arith.constant 0 : i32
    %c0_i32_1 = arith.constant 0 : i32
    return %c0_i32, %c0_i32_0 : i32, i32
  }
  func.func @transform_3(%arg0: i32) -> (i32, i32, i32) {
    %c0_i32 = arith.constant 0 : i32
    %c0_i32_0 = arith.constant 0 : i32
    %c0_i32_1 = arith.constant 0 : i32
    return %arg0, %c0_i32, %c0_i32_0 : i32, i32, i32
  }
}

module attributes {stable_mosaic.version = 11 : i64} {
  func.func @_head_kernel(%arg0: i32, %arg1: memref<2x64xbf16, #tpu.memory_space<vmem>>, %arg2: memref<64x512xbf16, #tpu.memory_space<vmem>>, %arg3: memref<1x512xf32, #tpu.memory_space<vmem>>, %arg4: memref<512x6xbf16, #tpu.memory_space<vmem>>, %arg5: memref<1x6xf32, #tpu.memory_space<vmem>>, %arg6: memref<2x6xf32, #tpu.memory_space<vmem>>) attributes {dimension_semantics = [#tpu.dimension_semantics<parallel>], iteration_bounds = array<i64: 1>, scalar_prefetch = 0 : i64, scratch_operands = 0 : i64, tpu.core_type = #tpu.core_type<tc>, window_params = [{transform_indices = @transform_0, window_bounds = array<i64: 2, 64>}, {pipeline_mode = #tpu.pipeline_mode<synchronous>, transform_indices = @transform_1, window_bounds = array<i64: 64, 512>}, {pipeline_mode = #tpu.pipeline_mode<synchronous>, transform_indices = @transform_2, window_bounds = array<i64: 1, 512>}, {pipeline_mode = #tpu.pipeline_mode<synchronous>, transform_indices = @transform_3, window_bounds = array<i64: 512, 6>}, {pipeline_mode = #tpu.pipeline_mode<synchronous>, transform_indices = @transform_4, window_bounds = array<i64: 1, 6>}, {transform_indices = @transform_5, window_bounds = array<i64: 2, 6>}]} {
    %c0 = arith.constant 0 : index
    %c0_0 = arith.constant 0 : index
    %0 = vector.load %arg1[%c0, %c0_0] : memref<2x64xbf16, #tpu.memory_space<vmem>>, vector<2x64xbf16>
    %c0_1 = arith.constant 0 : index
    %c0_2 = arith.constant 0 : index
    %1 = vector.load %arg2[%c0_1, %c0_2] : memref<64x512xbf16, #tpu.memory_space<vmem>>, vector<64x512xbf16>
    %cst = arith.constant dense<0.000000e+00> : vector<2x512xf32>
    %2 = tpu.matmul %0, %1, %cst {dimension_numbers = #tpu.dot_dimension_numbers<[1], [0], [0], [1], [0, 0, 1, 1], [], []>} : vector<2x64xbf16>, vector<64x512xbf16>, vector<2x512xf32> -> vector<2x512xf32>
    %c0_3 = arith.constant 0 : index
    %c0_4 = arith.constant 0 : index
    %3 = vector.load %arg3[%c0_3, %c0_4] : memref<1x512xf32, #tpu.memory_space<vmem>>, vector<1x512xf32>
    %4 = vector.broadcast %3 : vector<1x512xf32> to vector<2x512xf32>
    %5 = arith.addf %2, %4 : vector<2x512xf32>
    %cst_5 = arith.constant 0.000000e+00 : f32
    %6 = vector.broadcast %cst_5 : f32 to vector<2x512xf32>
    %7 = arith.maximumf %5, %6 : vector<2x512xf32>
    %8 = arith.truncf %7 : vector<2x512xf32> to vector<2x512xbf16>
    %c0_6 = arith.constant 0 : index
    %c0_7 = arith.constant 0 : index
    %9 = vector.load %arg4[%c0_6, %c0_7] : memref<512x6xbf16, #tpu.memory_space<vmem>>, vector<512x6xbf16>
    %cst_8 = arith.constant dense<0.000000e+00> : vector<2x6xf32>
    %10 = tpu.matmul %8, %9, %cst_8 {dimension_numbers = #tpu.dot_dimension_numbers<[1], [0], [0], [1], [0, 0, 1, 1], [], []>} : vector<2x512xbf16>, vector<512x6xbf16>, vector<2x6xf32> -> vector<2x6xf32>
    %c0_9 = arith.constant 0 : index
    %c0_10 = arith.constant 0 : index
    %11 = vector.load %arg5[%c0_9, %c0_10] : memref<1x6xf32, #tpu.memory_space<vmem>>, vector<1x6xf32>
    %12 = vector.broadcast %11 : vector<1x6xf32> to vector<2x6xf32>
    %13 = arith.addf %10, %12 : vector<2x6xf32>
    %c0_11 = arith.constant 0 : index
    %c0_12 = arith.constant 0 : index
    %14 = vector.load %arg6[%c0_11, %c0_12] : memref<2x6xf32, #tpu.memory_space<vmem>>, vector<2x6xf32>
    tpu.vector_store %arg6[%c0_11, %c0_12], %13 {strides = array<i32>} : memref<2x6xf32, #tpu.memory_space<vmem>>, vector<2x6xf32>,
    return
  }
  func.func @transform_0(%arg0: i32) -> (i32, i32) {
    %c0_i32 = arith.constant 0 : i32
    %c0_i32_0 = arith.constant 0 : i32
    return %arg0, %c0_i32 : i32, i32
  }
  func.func @transform_1(%arg0: i32) -> (i32, i32) {
    %c0_i32 = arith.constant 0 : i32
    %c0_i32_0 = arith.constant 0 : i32
    %c0_i32_1 = arith.constant 0 : i32
    return %c0_i32, %c0_i32_0 : i32, i32
  }
  func.func @transform_2(%arg0: i32) -> (i32, i32) {
    %c0_i32 = arith.constant 0 : i32
    %c0_i32_0 = arith.constant 0 : i32
    %c0_i32_1 = arith.constant 0 : i32
    return %c0_i32, %c0_i32_0 : i32, i32
  }
  func.func @transform_3(%arg0: i32) -> (i32, i32) {
    %c0_i32 = arith.constant 0 : i32
    %c0_i32_0 = arith.constant 0 : i32
    %c0_i32_1 = arith.constant 0 : i32
    return %c0_i32, %c0_i32_0 : i32, i32
  }
  func.func @transform_4(%arg0: i32) -> (i32, i32) {
    %c0_i32 = arith.constant 0 : i32
    %c0_i32_0 = arith.constant 0 : i32
    %c0_i32_1 = arith.constant 0 : i32
    return %c0_i32, %c0_i32_0 : i32, i32
  }
  func.func @transform_5(%arg0: i32) -> (i32, i32) {
    %c0_i32 = arith.constant 0 : i32
    %c0_i32_0 = arith.constant 0 : i32
    return %arg0, %c0_i32 : i32, i32
  }
}

</mosaic_0001>

<bundles_post_ra>
// kernel: dqn_forward.4
= control target key start
LH: loop header
LB: loop body
LE: loop exit
PB: predicated region body
PF: predicated region fallthrough
CT: control target
= control target key end

     0   :  { %s1191_s12 = smov 0   ;;  %s1400_s0 = inlined_call_operand.vmem [shape: bf16[2,9,9,64], index: 0, kind: input, shape index: {}]   ;;  %s1401_s1 = inlined_call_operand.vmem [shape: bf16[2,2,64,32], index: 1, kind: input, shape index: {}]   ;;  %s1402_s2 = inlined_call_operand.vmem [shape: f32[1,32], index: 2, kind: input, shape index: {}]   ;;  %s1403_s3 = inlined_call_operand.vmem [shape: bf16[2,64,32], index: 3, kind: output, shape index: {}]  }
   0x1 LB: > { %s934_s13 = sadd.s32 4294967295, %s1169_s12   ;;  %p938_p0 = scmp.ge.s32.totalorder %s1169_s12, 1  ;;  %s1169_s12 = sphi %s1191_s12, %s13_s12  }
   0x2   : > { %p137_p1 = scmp.lt.s32.totalorder %s1169_s12, 3 }
   0x4   : > { %p138_p2 = pnand %p938_p0, %p137_p1 }
   0x5   : > { %v1139_v0 = vld [vmem:[%s1401_s1 + $0x20] sm:$0xff] (!%p138_p2)   ;;  %p161_p3 = scmp.lt.s32.totalorder (!%p138_p2), %s934_s13, 1  ;;  %v1141_v2 = vld [vmem:[%s1401_s1 + $0x28] sm:$0xff] (!%p138_p2)   ;;  %v1143_v4 = vld [vmem:[%s1401_s1 + $0x30] sm:$0xff] (!%p138_p2)   ;;  %vm373_vm0 = vcmask (!%p138_p2), 523264   ;;  %vm870_vm4 = vcmask (!%p138_p2), 257024  }
   0x6   : > { %141 = sbr.rel (%p138_p2) target bundleno = 286 (0x11e), region = 32  ;;  %v1140_v1 = vld [vmem:[%s1401_s1 + $0x40] sm:$0xff] (!%p138_p2)   ;;  %1042 = vmatprep.subr.bf16.mxu1 (!%p138_p2), %v1139_v0  ;;  %v1142_v3 = vld [vmem:[%s1401_s1 + $0x48] sm:$0xff] (!%p138_p2)   ;;  %v1144_v5 = vld [vmem:[%s1401_s1 + $0x50] sm:$0xff] (!%p138_p2)   ;;  %vm222_vm1 = vsmask.f32 (!%p138_p2), 3328 }
   0x7   : > { %1074 = vmatprep.subr.bf16.mxu0 (!%p138_p2), %v1140_v1  ;;  %1043 = vmatpush3.bf16.msra.mxu1 (!%p138_p2), %v1139_v0  ;;  %v1145_v6 = vld [vmem:[%s1401_s1 + $0x38] sm:$0xff] (!%p138_p2)   ;;  %vm223_vm2 = vsmask.f32 (!%p138_p2), 7440  ;;  %v1265_v34 = vld [vmem:[%s1401_s1] sm:$0xff] (!%p138_p2)   ;;  %v1153_v52 = vld [vmem:[%s1401_s1 + $0x68] sm:$0xff] (!%p138_p2)  }
   0x8   : > { %1075 = vmatpush3.bf16.msra.mxu0 (!%p138_p2), %v1140_v1  ;;  %1044 = vmatprep.subr.bf16.mxu1 (!%p138_p2), %v1141_v2  ;;  %v1146_v7 = vld [vmem:[%s1401_s1 + $0x58] sm:$0xff] (!%p138_p2)   ;;  %v1151_v43 = vld [vmem:[%s1401_s1 + $0x60] sm:$0xff] (!%p138_p2)   ;;  %vm1274_vm3 = vmor (!%p138_p2), %vm222_vm1, %vm223_vm2 }
   0x9   : > { %1076 = vmatprep.subr.bf16.mxu0 (!%p138_p2), %v1142_v3 }
   0xb   : > { %1045 = vmatpush3.bf16.msra.mxu1 (!%p138_p2), %v1141_v2 }
   0xc   : > { %1077 = vmatpush3.bf16.msra.mxu0 (!%p138_p2), %v1142_v3  ;;  %1046 = vmatprep.subr.bf16.mxu1 (!%p138_p2), %v1143_v4 }
   0xd   : > { %s1407_s13 = smov (!%p161_p3, %s934_s13), 1  ;;  %1078 = vmatprep.subr.bf16.mxu0 %v1144_v5 }
   0xe   : > { %s1130_s24 = smul.u32 72, %s1407_s13  ;;  %s1001_s27 = sshll.u32 %s1407_s13, 5 }
   0xf   : > { %1047 = vmatpush3.bf16.msra.mxu1 %v1143_v4  ;;  %s1379_s30 = scalar_lea.vmem %s1403_s3, %s1001_s27 }
  0x10   : > { %s1223_s29 = scalar_lea.vmem %s1400_s0, %s1130_s24  ;;  %1079 = vmatpush3.bf16.msra.mxu0 %v1144_v5  ;;  %1048 = vmatprep.subr.bf16.mxu1 %v1145_v6 }
  0x11   : > { %v1232_v8 = vld [vmem:[%s1223_s29 + $0x8] sm:$0xf]  ;;  %v1235_v9 = vld [vmem:[%s1223_s29 + $0x10] sm:$0xf]  ;;  %v1238_v10 = vld [vmem:[%s1223_s29 + $0x18] sm:$0xf]  ;;  %1080 = vmatprep.subr.bf16.mxu0 %v1146_v7 }
  0x12   : > { %v240_v11 = vshrl.u32 %v1232_v8, 16  ;;  %v243_v12 = vshll.u32 %v1232_v8, 16  ;;  %v254_v13 = vshrl.u32 %v1235_v9, 16  ;;  %v257_v14 = vshll.u32 %v1235_v9, 16  ;;  %v1247_v16 = vld [vmem:[%s1223_s29] sm:$0xf] }
  0x13   : > { %v966_v15 = vcombine.low %v1232_v8, %v1235_v9  ;;  %v173_v17 = vld [vmem:[%s1223_s29 + $0x4] sm:$0x1]  ;;  %v175_v18 = vld [vmem:[%s1223_s29 + $0xc] sm:$0x1]  ;;  %v177_v21 = vld [vmem:[%s1223_s29 + $0x14] sm:$0x1]  ;;  %1049 = vmatpush3.bf16.msra.mxu1 %v1145_v6 }
  0x14   : > { %v256_v19 = vrot.slane %v254_v13, 4  ;;  %v259_v20 = vrot.slane %v257_v14, 5  ;;  %v1253_v22 = vld [vmem:[%s1223_s29 + $0x20] sm:$0xf]  ;;  %v179_v23 = vld [vmem:[%s1223_s29 + $0x1c] sm:$0x1]  ;;  %1081 = vmatpush3.bf16.msra.mxu0 %v1146_v7  ;;  %1058 = vmatprep.subr.bf16.mxu1 %v1265_v34 }
  0x15   : > { %v967_v24 = vcombine.low %v1238_v10, %v1253_v22  ;;  %1082 = vmatprep.mubr.msk.bf16.mxu0 %vm373_vm0, %v966_v15  ;;  %v226_v25 = vshrl.u32 %v1247_v16, 16  ;;  %v229_v26 = vshll.u32 %v1247_v16, 16  ;;  %v235_v27 = vshll.u32 %v173_v17, 16  ;;  %v181_v29 = vld [vmem:[%s1223_s29 + $0x24] sm:$0x1]  ;;  %1090 = vmatprep.subr.bf16.mxu0 %v1151_v43  ;;  %v1157_v15 = vld [vmem:[%s1401_s1 + $0x70] sm:$0xff]  }
  0x16   : > { %v242_v28 = vrot.slane %v240_v11, 4  ;;  %v245_v30 = vrot.slane %v243_v12, 5  ;;  %v249_v31 = vshll.u32 %v175_v18, 16  ;;  %v260_v32 = vor.u32 %v259_v20, %v256_v19  ;;  %v1294_v60 = vld [vmem:[%s1223_s29 + $0x28] sm:$0xf] }
  0x17   : > { %v263_v33 = vshll.u32 %v177_v21, 16  ;;  %v228_v35 = vrot.slane %v226_v25, 4  ;;  %v231_v36 = vrot.slane %v229_v26, 5  ;;  %v237_v37 = vrot.slane %v235_v27, 5  ;;  %1083 = vmatmul.mubr.msk.bf16.vlgmr.msra.gmra.mrb[0].mxu0 %vm373_vm0, %v967_v24  ;;  %v1299_v1 = vld [vmem:[%s1223_s29 + $0x30] sm:$0xf] }
  0x18   : > { %v268_v38 = vshrl.u32 %v1238_v10, 16  ;;  %v246_v39 = vor.u32 %v245_v30, %v242_v28  ;;  %v251_v40 = vrot.slane %v249_v31, 5  ;;  %v261_v41 = vrot.slane %v260_v32, 4  ;;  %1091 = vmatpush3.bf16.msra.mxu0 %v1151_v43  ;;  %v183_v2 = vld [vmem:[%s1223_s29 + $0x2c] sm:$0x1] }
  0x19   : > { %v265_v42 = vrot.slane %v263_v33, 5  ;;  %v232_v45 = vor.u32 %v231_v36, %v228_v35  ;;  %v271_v47 = vshll.u32 %v1238_v10, 16  ;;  %v277_v48 = vshll.u32 %v179_v23, 16  ;;  %1092 = vmatprep.subr.bf16.mxu0 %v1153_v52  ;;  %v1310_v14 = vld [vmem:[%s1223_s29 + $0x38] sm:$0xf] }
  0x1a   : > { %v270_v46 = vrot.slane %v268_v38, 4  ;;  %v247_v49 = vrot.slane %v246_v39, 4  ;;  %v282_v50 = vshrl.u32 %v1253_v22, 16  ;;  %v285_v51 = vshll.u32 %v1253_v22, 16  ;;  %v188_v21 = vld [vmem:[%s1223_s29 + $0x40] sm:$0xf] }
  0x1b   : > { %v233_v53 = vrot.slane %v232_v45, 4  ;;  %v273_v54 = vrot.slane %v271_v47, 5  ;;  %v291_v55 = vshll.u32 %v181_v29, 16  ;;  %v1291_v57 = vsel %vm1274_vm3, %v261_v41, %v265_v42  ;;  %v1152_v29 = vld [vmem:[%s1401_s1 + $0x8] sm:$0xff]   ;;  %v185_v32 = vld [vmem:[%s1223_s29 + $0x34] sm:$0x1] }
  0x1c   : > { %v1287_v56 = vsel %vm1274_vm3, %v247_v49, %v251_v40  ;;  %v284_v58 = vrot.slane %v282_v50, 4  ;;  %v287_v59 = vrot.slane %v285_v51, 5  ;;  %v279_v63 = vrot.slane %v277_v48, 5  ;;  %1093 = vmatpush3.bf16.msra.mxu0 %v1153_v52  ;;  %v187_v33 = vld [vmem:[%s1223_s29 + $0x3c] sm:$0x1]  ;;  %v1155_v51 = vld [vmem:[%s1401_s1 + $0x10] sm:$0xff]  }
  0x1d   : > { %v238_v61 = vsel %vm1274_vm3, %v233_v53, %v237_v37  ;;  %v274_v62 = vor.u32 %v273_v54, %v270_v46  ;;  %v293_v0 = vrot.slane %v291_v55, 5  ;;  %v296_v5 = vshrl.u32 %v1294_v60, 16  ;;  %1094 = vmatprep.subr.bf16.mxu0 %v1157_v15  ;;  %v1159_v39 = vld [vmem:[%s1401_s1 + $0x78] sm:$0xff]   ;;  %v189_v54 = vld [vmem:[%s1223_s29 + $0x44] sm:$0x1] }
  0x1e   : > { %v288_v3 = vor.u32 %v287_v59, %v284_v58  ;;  %v942_v4 = vcombine.low %v238_v61, %v1287_v56  ;;  %v299_v6 = vshll.u32 %v1294_v60, 16  ;;  %v310_v11 = vshrl.u32 %v1299_v1, 16 }
  0x1f   : > { %v275_v7 = vrot.slane %v274_v62, 4  ;;  %v313_v12 = vshll.u32 %v1299_v1, 16  ;;  %v968_v13 = vcombine.low %v1294_v60, %v1299_v1  ;;  %v298_v18 = vrot.slane %v296_v5, 4 }
  0x20   : > { %v289_v17 = vrot.slane %v288_v3, 4  ;;  %1050 = vmatprep.mubr.msk.bf16.mxu1 %vm373_vm0, %v942_v4  ;;  %v301_v19 = vrot.slane %v299_v6, 5  ;;  %v305_v20 = vshll.u32 %v183_v2, 16  ;;  %v324_v24 = vshrl.u32 %v1310_v14, 16  ;;  %1095 = vmatpush3.bf16.msra.mxu0 %v1157_v15 }
  0x21   : > { %v280_v23 = vsel %vm1274_vm3, %v275_v7, %v279_v63  ;;  %1086 = vmatprep.mubr.msk.bf16.mxu0 %vm373_vm0, %v968_v13  ;;  %v327_v25 = vshll.u32 %v1310_v14, 16  ;;  %v969_v26 = vcombine.low %v1310_v14, %v188_v21  ;;  %v978_v28 = vcombine.low %v1287_v56, %v1291_v57  ;;  %1096 = vmatprep.subr.bf16.mxu0 %v1159_v39 }
  0x22   : > { %v943_v27 = vcombine.low %v1291_v57, %v280_v23  ;;  %v302_v30 = vor.u32 %v301_v19, %v298_v18  ;;  %v307_v31 = vrot.slane %v305_v20, 5  ;;  %v294_v35 = vsel %vm1274_vm3, %v289_v17, %v293_v0  ;;  %v1158_v0 = vld [vmem:[%s1401_s1 + $0x18] sm:$0xff]  }
  0x23   : > { %1087 = vmatmul.mubr.msk.bf16.gmra.mrb[4].mxu0 %vm373_vm0, %v969_v26  ;;  %v688_v36 = vshrl.u32 %v188_v21, 16  ;;  %v691_v37 = vshll.u32 %v188_v21, 16  ;;  %v312_v38 = vrot.slane %v310_v11, 4  ;;  %v315_v41 = vrot.slane %v313_v12, 5 }
  0x24   : > { %1051 = vmatmul.mubr.msk.bf16.vlgmr.msra.gmra.mrb[0].mxu1 %vm373_vm0, %v943_v27  ;;  %v303_v40 = vrot.slane %v302_v30, 4  ;;  %v319_v42 = vshll.u32 %v185_v32, 16  ;;  %v326_v43 = vrot.slane %v324_v24, 4  ;;  %v329_v47 = vrot.slane %v327_v25, 5  ;;  %1098 = vmatprep.mubr.msk.bf16.mxu0 %vm373_vm0, %v978_v28 }
  0x25   : > { %1059 = vmatpush3.bf16.msra.mxu1 %v1265_v34  ;;  %v690_v45 = vrot.slane %v688_v36, 4  ;;  %v693_v46 = vrot.slane %v691_v37, 5  ;;  %v333_v48 = vshll.u32 %v187_v33, 16  ;;  %v979_v49 = vcombine.low %v280_v23, %v294_v35  ;;  %1097 = vmatpush3.bf16.msra.mxu0 %v1159_v39 }
  0x26   : > { %1060 = vmatprep.subr.bf16.mxu1 %v1152_v29  ;;  %v308_v50 = vsel %vm1274_vm3, %v303_v40, %v307_v31  ;;  %v316_v52 = vor.u32 %v315_v41, %v312_v38  ;;  %v321_v53 = vrot.slane %v319_v42, 5  ;;  %v330_v55 = vor.u32 %v329_v47, %v326_v43 }
  0x27   : > { %v944_v34 = vcombine.low %v294_v35, %v308_v50  ;;  %v335_v56 = vrot.slane %v333_v48, 5  ;;  %v694_v57 = vor.u32 %v693_v46, %v690_v45  ;;  %v697_v59 = vshll.u32 %v189_v54, 16 }
  0x28   : > { %v317_v58 = vrot.slane %v316_v52, 4  ;;  %v331_v61 = vrot.slane %v330_v55, 4  ;;  %v954_v4 = vcombine.low %v1247_v16, %v1232_v8  ;;  %v955_v8 = vcombine.low %v1235_v9, %v1238_v10 }
  0x29   : > { %1061 = vmatpush3.bf16.msra.mxu1 %v1152_v29  ;;  %1054 = vmatprep.mubr.msk.bf16.mxu1 %vm373_vm0, %v944_v34  ;;  %v695_v62 = vrot.slane %v694_v57, 4  ;;  %v699_v2 = vrot.slane %v697_v59, 5  ;;  %v956_v16 = vcombine.low %v1253_v22, %v1294_v60  ;;  %v957_v44 = vcombine.low %v1299_v1, %v1310_v14  ;;  %v990_v60 = vld [vmem:[%s1402_s2] ss:$0 sm:$0xff] }
  0x2a   : > { %1062 = vmatprep.subr.bf16.mxu1 %v1155_v51  ;;  %v322_v63 = vsel %vm1274_vm3, %v317_v58, %v321_v53  ;;  %v336_v3 = vsel %vm1274_vm3, %v331_v61, %v335_v56 }
  0x2b   : > { %1099 = vmatmul.mubr.msk.bf16.vlgmr.msra.gmra.mrb[0].mxu0 %vm373_vm0, %v979_v49  ;;  %v980_v5 = vcombine.low %v308_v50, %v322_v63  ;;  %v945_v6 = vcombine.low %v322_v63, %v336_v3  ;;  %v700_v7 = vsel %vm1274_vm3, %v695_v62, %v699_v2 }
  0x2c   : > { %v981_v11 = vcombine.low %v336_v3, %v700_v7 }
  0x2d   : > { %1063 = vmatpush3.bf16.msra.mxu1 %v1155_v51  ;;  %1102 = vmatprep.mubr.msk.bf16.mxu0 %vm373_vm0, %v980_v5 }
  0x2e   : > { %1055 = vmatmul.mubr.msk.bf16.gmra.mrb[4].mxu1 %vm373_vm0, %v945_v6  ;;  %1064 = vmatprep.subr.bf16.mxu1 %v1158_v0 }
  0x2f   : > { %1066 = vmatprep.mubr.msk.bf16.mxu1 %vm373_vm0, %v954_v4 }
  0x31   : > { %1065 = vmatpush3.bf16.msra.mxu1 %v1158_v0 }
  0x33   : > { %1103 = vmatmul.mubr.msk.bf16.gmra.mrb[4].mxu0 %vm373_vm0, %v981_v11 }
  0x36   : > { %1067 = vmatmul.mubr.msk.bf16.vlgmr.msra.gmra.mrb[0].mxu1 %vm373_vm0, %v955_v8 }
  0x37   : > { %1070 = vmatprep.mubr.msk.bf16.mxu1 %vm373_vm0, %v956_v16 }
  0x3e   : > { %1071 = vmatmul.mubr.msk.bf16.gmra.mrb[4].mxu1 %vm373_vm0, %v957_v44 }
  0xfe   : > { %v1100_v12 = vpop.f32.mrb[0].mxu0 }
  0xff   : > { %v776_v13 = vpop.f32.mrb[1].mxu0 }
 0x100   : > { %v1101_v15 = vpop.f32.mrb[2].mxu0 }
 0x101   : > { %v779_v17 = vpop.f32.mrb[3].mxu0 }
 0x106   : > { %v1104_v9 = vpop.f32.mrb[4].mxu0 }
 0x107   : > { %v792_v10 = vpop.f32.mrb[5].mxu0 }
 0x108   : > { %v1105_v18 = vpop.f32.mrb[6].mxu0 }
 0x109   : > { %v1068_v22 = vpop.f32.mrb[0].mxu1  ;;  %v795_v19 = vpop.f32.mrb[7].mxu0 }
 0x10a   : > { %v1106_v20 = vadd.f32 %v1100_v12, %v1068_v22  ;;  %v541_v21 = vpop.f32.mrb[1].mxu1 }
 0x10b   : > { %v1107_v23 = vadd.f32 %v776_v13, %v541_v21  ;;  %v1069_v1 = vpop.f32.mrb[2].mxu1 }
 0x10c   : > { %v824_v14 = vadd.f32 %v1106_v20, %v990_v60  ;;  %v1108_v24 = vadd.f32 %v1101_v15, %v1069_v1  ;;  %v544_v25 = vpop.f32.mrb[3].mxu1 }
 0x10d   : > { %v822_v26 = vadd.f32 %v1107_v23, %v990_v60  ;;  %v1109_v27 = vadd.f32 %v779_v17, %v544_v25 }
 0x10e   : > { %v832_v28 = vmax.f32 %v824_v14, 0.0  ;;  %v825_v29 = vadd.f32 %v1108_v24, %v990_v60 }
 0x10f   : > { %v830_v30 = vmax.f32 %v822_v26, 0.0  ;;  %v823_v31 = vadd.f32 %v1109_v27, %v990_v60 }
 0x110   : > { %v1004_v32 = vpack.c.bf16 %v832_v28, %v832_v28  ;;  %v833_v33 = vmax.f32 %v825_v29, 0.0 }
 0x111   : > { %v1002_v35 = vpack.c.bf16 %v830_v30, %v830_v30  ;;  %v831_v36 = vmax.f32 %v823_v31, 0.0  ;;  %v1072_v37 = vpop.f32.mrb[4].mxu1 }
 0x112   : > { %873 = vst.msk [vmem:[%s1379_s30 + $0x8] sm:$0xf] %vm870_vm4, %v1004_v32  ;;  %v1005_v38 = vpack.c.bf16 %v833_v33, %v833_v33  ;;  %v1110_v39 = vadd.f32 %v1104_v9, %v1072_v37  ;;  %v557_v40 = vpop.f32.mrb[5].mxu1 }
 0x113   : > { %871 = vst.msk [vmem:[%s1379_s30] sm:$0xf] %vm870_vm4, %v1002_v35  ;;  %v1003_v41 = vpack.c.bf16 %v831_v36, %v831_v36  ;;  %v1111_v42 = vadd.f32 %v792_v10, %v557_v40  ;;  %v1073_v43 = vpop.f32.mrb[6].mxu1 }
 0x114   : > { %874 = vst.msk [vmem:[%s1379_s30 + $0xc] sm:$0xf] %vm870_vm4, %v1005_v38  ;;  %v828_v45 = vadd.f32 %v1110_v39, %v990_v60  ;;  %v1112_v46 = vadd.f32 %v1105_v18, %v1073_v43  ;;  %v560_v47 = vpop.f32.mrb[7].mxu1 }
 0x115   : > { %872 = vst.msk [vmem:[%s1379_s30 + $0x4] sm:$0xf] %vm870_vm4, %v1003_v41  ;;  %v826_v48 = vadd.f32 %v1111_v42, %v990_v60  ;;  %v1113_v49 = vadd.f32 %v795_v19, %v560_v47 }
 0x116   : > { %v836_v50 = vmax.f32 %v828_v45, 0.0  ;;  %v829_v51 = vadd.f32 %v1112_v46, %v990_v60 }
 0x117   : > { %v834_v52 = vmax.f32 %v826_v48, 0.0  ;;  %v827_v53 = vadd.f32 %v1113_v49, %v990_v60 }
 0x118   : > { %v1008_v54 = vpack.c.bf16 %v836_v50, %v836_v50  ;;  %v837_v34 = vmax.f32 %v829_v51, 0.0 }
 0x119   : > { %v1006_v55 = vpack.c.bf16 %v834_v52, %v834_v52  ;;  %v835_v56 = vmax.f32 %v827_v53, 0.0 }
 0x11a   : > { %877 = vst.msk [vmem:[%s1379_s30 + $0x18] sm:$0xf] %vm870_vm4, %v1008_v54  ;;  %v1009_v57 = vpack.c.bf16 %v837_v34, %v837_v34 }
 0x11b   : > { %875 = vst.msk [vmem:[%s1379_s30 + $0x10] sm:$0xf] %vm870_vm4, %v1006_v55  ;;  %v1007_v58 = vpack.c.bf16 %v835_v56, %v835_v56 }
 0x11c   : > { %878 = vst.msk [vmem:[%s1379_s30 + $0x1c] sm:$0xf] %vm870_vm4, %v1009_v57 }
 0x11d   : > { %876 = vst.msk [vmem:[%s1379_s30 + $0x14] sm:$0xf] %vm870_vm4, %v1007_v58 }
 0x11e PF: > { %s13_s12 = sadd.s32 1, %s1169_s12  }
 0x11f   : > { %p10_p4 = scmp.ge.s32.totalorder %s13_s12, 4  }
 0x121   :  { %12 = sbr.rel (!%p10_p4) target bundleno = 1 (0x1), region = 62 }

// kernel: dqn_forward.5
= control target key start
LH: loop header
LB: loop body
LE: loop exit
PB: predicated region body
PF: predicated region fallthrough
CT: control target
= control target key end

     0   :  { %s1162_s12 = smov 0   ;;  %s1391_s0 = inlined_call_operand.vmem [shape: bf16[2,4,4,128], index: 0, kind: input, shape index: {}]   ;;  %s1392_s1 = inlined_call_operand.vmem [shape: bf16[2,2,128,64], index: 1, kind: input, shape index: {}]   ;;  %s1393_s2 = inlined_call_operand.vmem [shape: f32[1,64], index: 2, kind: input, shape index: {}]   ;;  %s1394_s3 = inlined_call_operand.vmem [shape: bf16[2,9,64], index: 3, kind: output, shape index: {}]  }
   0x1 LB: > { %s912_s13 = sadd.s32 4294967295, %s1137_s12   ;;  %p916_p0 = scmp.ge.s32.totalorder %s1137_s12, 1  ;;  %s1137_s12 = sphi %s1162_s12, %s13_s12  }
   0x2   : > { %p137_p1 = scmp.lt.s32.totalorder %s1137_s12, 3 }
   0x4   : > { %p138_p2 = pnand %p916_p0, %p137_p1 }
   0x5   : > { %v1099_v0 = vld [vmem:[%s1392_s1 + $0x40] sm:$0xff] (!%p138_p2)   ;;  %v1139_v1 = vmov (!%p138_p2), 0.0   ;;  %v1101_v3 = vld [vmem:[%s1392_s1 + $0x48] sm:$0xff] (!%p138_p2)   ;;  %vm1140_vm0 = vmmov (!%p138_p2), 0   ;;  %p161_p3 = scmp.lt.s32.totalorder (!%p138_p2), %s912_s13, 1  ;;  %v1103_v5 = vld [vmem:[%s1392_s1 + $0x50] sm:$0xff] (!%p138_p2)   ;;  %v289_v9 = vlaneseq (!%p138_p2) }
   0x6   : > { %141 = sbr.rel (%p138_p2) target bundleno = 296 (0x128), region = 32  ;;  %1008 = vmatprep.subr.bf16.mxu0 (!%p138_p2), %v1139_v1  ;;  %1028 = vmatprep.subr.bf16.mxu1 (!%p138_p2), %v1139_v1  ;;  %v1100_v2 = vld [vmem:[%s1392_s1] sm:$0xff] (!%p138_p2)   ;;  %v1102_v4 = vld [vmem:[%s1392_s1 + $0x8] sm:$0xff] (!%p138_p2)   ;;  %v1104_v6 = vld [vmem:[%s1392_s1 + $0x10] sm:$0xff] (!%p138_p2)   ;;  %v1141_v18 = vmov (!%p138_p2), 1966171168  }
   0x7   : > { %1009 = vmatpush3.bf16.msra.mxu0 (!%p138_p2), %v1099_v0  ;;  %1024 = vmatprep.mubr.msk.bf16.mxu0 (!%p138_p2), %vm1140_vm0, %v1139_v1  ;;  %v1105_v7 = vld [vmem:[%s1392_s1 + $0x58] sm:$0xff] (!%p138_p2)   ;;  %v1107_v10 = vld [vmem:[%s1392_s1 + $0x60] sm:$0xff] (!%p138_p2)   ;;  %v290_v12 = vshrl.u32 (!%p138_p2), %v289_v9, 7  ;;  %v1109_v13 = vld [vmem:[%s1392_s1 + $0x68] sm:$0xff] (!%p138_p2)   ;;  %v287_v19 = vunpack.c.l.s4 (!%p138_p2), %v1141_v18  ;;  %vm851_vm1 = vcmask (!%p138_p2), 516096   ;;  %vm849_vm3 = vcmask (!%p138_p2), 519168  }
   0x8   : > { %1029 = vmatpush3.bf16.msra.mxu1 (!%p138_p2), %v1100_v2  ;;  %1010 = vmatprep.subr.bf16.mxu0 (!%p138_p2), %v1139_v1  ;;  %v1106_v8 = vld [vmem:[%s1392_s1 + $0x18] sm:$0xff] (!%p138_p2)   ;;  %v1108_v11 = vld [vmem:[%s1392_s1 + $0x20] sm:$0xff] (!%p138_p2)   ;;  %v1110_v23 = vld [vmem:[%s1392_s1 + $0x28] sm:$0xff] (!%p138_p2)   ;;  %vm852_vm2 = vsmask.f32 (!%p138_p2), 256 }
   0x9   : > { %1030 = vmatprep.subr.bf16.mxu1 (!%p138_p2), %v1139_v1  ;;  %1044 = vmatprep.mubr.msk.bf16.mxu1 (!%p138_p2), %vm1140_vm0, %v1139_v1  ;;  %v288_v28 = vunpack.c.0.s8 (!%p138_p2), %v287_v19  ;;  %v1111_v35 = vld [vmem:[%s1392_s1 + $0x70] sm:$0xff] (!%p138_p2)   ;;  %v1113_v48 = vld [vmem:[%s1392_s1 + $0x78] sm:$0xff] (!%p138_p2)   ;;  %v1115_v57 = vld [vmem:[%s1392_s1 + $0x80] sm:$0xff] (!%p138_p2)  }
   0xa   : > { %v1112_v39 = vld [vmem:[%s1392_s1 + $0x30] sm:$0xff] (!%p138_p2)   ;;  %v1114_v51 = vld [vmem:[%s1392_s1 + $0x38] sm:$0xff] (!%p138_p2)   ;;  %v1116_v59 = vld [vmem:[%s1392_s1 + $0xc0] sm:$0xff] (!%p138_p2)  }
   0xb   : > { %1011 = vmatpush3.bf16.msra.mxu0 (!%p138_p2), %v1101_v3  ;;  %v1263_v36 = vsub.s32 (!%p138_p2), %v288_v28, %v290_v12  ;;  %v1117_v60 = vld [vmem:[%s1392_s1 + $0x88] sm:$0xff] (!%p138_p2)   ;;  %v1119_v63 = vld [vmem:[%s1392_s1 + $0x90] sm:$0xff] (!%p138_p2)   ;;  %v1122_v9 = vld [vmem:[%s1392_s1 + $0xd8] sm:$0xff] (!%p138_p2)  }
   0xc   : > { %1031 = vmatpush3.bf16.msra.mxu1 (!%p138_p2), %v1102_v4  ;;  %1012 = vmatprep.subr.bf16.mxu0 (!%p138_p2), %v1139_v1  ;;  %v1118_v61 = vld [vmem:[%s1392_s1 + $0xc8] sm:$0xff] (!%p138_p2)   ;;  %v1120_v4 = vld [vmem:[%s1392_s1 + $0xd0] sm:$0xff] (!%p138_p2)   ;;  %v1123_v12 = vld [vmem:[%s1392_s1 + $0xa0] sm:$0xff] (!%p138_p2)  }
   0xd   : > { %s1396_s13 = smov (!%p161_p3, %s912_s13), 1  ;;  %1032 = vmatprep.subr.bf16.mxu1 %v1139_v1  ;;  %v1125_v19 = vld [vmem:[%s1392_s1 + $0xa8] sm:$0xff]   ;;  %vm853_vm4 = vmand %vm851_vm1, %vm852_vm2 }
   0xe   : > { %s968_s28 = sshll.u32 %s1396_s13, 3 }
   0xf   : > { %1013 = vmatpush3.bf16.msra.mxu0 %v1103_v5  ;;  %s1214_s6 = scalar_lea.vmem %s1391_s0, %s968_s28  ;;  %s170_s11 = scalar_lea.vmem %s1394_s3, %s968_s28 }
  0x10   : > { %1033 = vmatpush3.bf16.msra.mxu1 %v1104_v6  ;;  %1014 = vmatprep.subr.bf16.mxu0 %v1139_v1  ;;  %v921_v14 = vld.sshfl [vmem:[%s1214_s6] sm:$0x11 pattern:$0x75316420]  ;;  %v1121_v6 = vld [vmem:[%s1392_s1 + $0x98] sm:$0xff]  }
  0x11   : > { %1034 = vmatprep.subr.bf16.mxu1 %v1139_v1  ;;  %v1229_v15 = vld.sshfl [vmem:[%s1214_s6 + $0x2] sm:$0x11 pattern:$0x75316420]  ;;  %v250_v16 = vcombine.high %v921_v14, %v921_v14  ;;  %v268_v17 = vunpack.i.h.s16 %v921_v14 }
  0x12   : > { %v1232_v20 = vld.sshfl [vmem:[%s1214_s6 + $0x4] sm:$0x11 pattern:$0x75316420]  ;;  %v1236_v21 = vcombine.high %v1229_v15, %v1229_v15  ;;  %v271_v22 = vunpack.i.h.s16 %v1229_v15 }
  0x13   : > { %1015 = vmatpush3.bf16.msra.mxu0 %v1105_v7  ;;  %v1245_v24 = vcombine.high %v1232_v20, %v1232_v20  ;;  %v274_v25 = vunpack.i.h.s16 %v1232_v20  ;;  %v276_v26 = vunpack.i.h.s16 %v250_v16  ;;  %v924_v27 = vpack.i.b16 %v250_v16, %v268_v17  ;;  %v944_v62 = vld.sshfl [vmem:[%s1214_s6 + $0x6] sm:$0x11 pattern:$0x75316420] }
  0x14   : > { %1035 = vmatpush3.bf16.msra.mxu1 %v1106_v8  ;;  %1016 = vmatprep.subr.bf16.mxu0 %v1139_v1  ;;  %v934_v29 = vpack.i.b16 %v1229_v15, %v250_v16  ;;  %v1251_v30 = vpack.i.b16 %v1236_v21, %v271_v22  ;;  %v555_v0 = vcombine.high %v944_v62, %v944_v62  ;;  %v277_v2 = vunpack.i.h.s16 %v1236_v21  ;;  %v1124_v16 = vld [vmem:[%s1392_s1 + $0xe0] sm:$0xff]  }
  0x15   : > { %1036 = vmatprep.subr.bf16.mxu1 %v1139_v1  ;;  %v278_v31 = vunpack.i.h.s16 %v1245_v24  ;;  %v280_v32 = vpack.i.b16 %v271_v22, %v276_v26  ;;  %v1257_v33 = vpack.i.b16 %v1245_v24, %v274_v25  ;;  %v275_v34 = vunpack.i.l.s16 %v1245_v24  ;;  %v1127_v26 = vld [vmem:[%s1392_s1 + $0xb0] sm:$0xff]  }
  0x16   : > { %v418_v37 = vcombine.low %v921_v14, %v934_v29  ;;  %v419_v38 = vcombine.low %v1251_v30, %v1232_v20  ;;  %v557_v3 = vunpack.i.h.s16 %v944_v62  ;;  %v945_v5 = vpack.i.b16 %v1232_v20, %v1236_v21  ;;  %v1128_v29 = vld [vmem:[%s1392_s1 + $0xf0] sm:$0xff]  }
  0x17   : > { %1017 = vmatpush3.bf16.msra.mxu0 %v1107_v10  ;;  %v284_v40 = vcombine.low %v924_v27, %v280_v32  ;;  %v285_v41 = vcombine.low %v1236_v21, %v1257_v33  ;;  %v306_v42 = vrot.slane %v278_v31, %v1263_v36  ;;  %v440_v45 = vrot.slane %v275_v34, %v1263_v36  ;;  %v1129_v32 = vld [vmem:[%s1392_s1 + $0xb8] sm:$0xff]  }
  0x18   : > { %1037 = vmatpush3.bf16.msra.mxu1 %v1108_v11  ;;  %1018 = vmatprep.subr.bf16.mxu0 %v1139_v1  ;;  %v426_v43 = vrot.slane %v418_v37, %v1263_v36  ;;  %v433_v44 = vrot.slane %v419_v38, %v1263_v36  ;;  %v695_v7 = vpack.i.b16 %v274_v25, %v277_v2  ;;  %v694_v20 = vunpack.i.h.s16 %v555_v0  ;;  %v854_v2 = vld [vmem:[%s170_s11 + $0x4] sm:$0x1] }
  0x19   : > { %1038 = vmatprep.subr.bf16.mxu1 %v1139_v1  ;;  %v292_v46 = vrot.slane %v284_v40, %v1263_v36  ;;  %v299_v47 = vrot.slane %v285_v41, %v1263_v36  ;;  %v455_v50 = vrot.slane %v440_v45, %v1263_v36  ;;  %v321_v53 = vrot.slane %v306_v42, %v1263_v36 }
  0x1a   : > { %v441_v49 = vcombine.low %v426_v43, %v433_v44  ;;  %v954_v8 = vpack.i.b16 %v555_v0, %v557_v3  ;;  %v563_v10 = vcombine.low %v1229_v15, %v945_v5  ;;  %v564_v11 = vcombine.low %v1257_v33, %v944_v62 }
  0x1b   : > { %1019 = vmatpush3.bf16.msra.mxu0 %v1109_v13  ;;  %v307_v52 = vcombine.low %v292_v46, %v299_v47  ;;  %v699_v13 = vcombine.low %v1251_v30, %v695_v7  ;;  %v558_v15 = vunpack.i.l.s16 %v555_v0  ;;  %v721_v27 = vrot.slane %v694_v20, %v1263_v36 }
  0x1c   : > { %1039 = vmatpush3.bf16.msra.mxu1 %v1110_v23  ;;  %1020 = vmatprep.subr.bf16.mxu0 %v1139_v1  ;;  %v448_v54 = vrot.slane %v441_v49, %v1263_v36  ;;  %v700_v14 = vcombine.low %v1245_v24, %v954_v8  ;;  %v571_v17 = vrot.slane %v563_v10, %v1263_v36  ;;  %v1126_v23 = vld [vmem:[%s1392_s1 + $0xe8] sm:$0xff]  }
  0x1d   : > { %1040 = vmatprep.subr.bf16.mxu1 %v1139_v1  ;;  %v314_v55 = vrot.slane %v307_v52, %v1263_v36  ;;  %v578_v18 = vrot.slane %v564_v11, %v1263_v36  ;;  %v707_v21 = vrot.slane %v699_v13, %v1263_v36  ;;  %v585_v24 = vrot.slane %v558_v15, %v1263_v36 }
  0x1e   : > { %v456_v56 = vcombine.low %v448_v54, %v455_v50  ;;  %v714_v22 = vrot.slane %v700_v14, %v1263_v36  ;;  %v736_v34 = vrot.slane %v721_v27, %v1263_v36 }
  0x1f   : > { %1021 = vmatpush3.bf16.msra.mxu0 %v1111_v35  ;;  %v322_v58 = vcombine.low %v314_v55, %v321_v53  ;;  %v586_v25 = vcombine.low %v571_v17, %v578_v18  ;;  %v600_v31 = vrot.slane %v585_v24, %v1263_v36  ;;  %v1130_v35 = vld [vmem:[%s1392_s1 + $0xf8] sm:$0xff]  }
  0x20   : > { %1041 = vmatpush3.bf16.msra.mxu1 %v1112_v39  ;;  %1022 = vmatprep.subr.bf16.mxu0 %v1139_v1  ;;  %v722_v28 = vcombine.low %v707_v21, %v714_v22 }
  0x21   : > { %1042 = vmatprep.subr.bf16.mxu1 %v1139_v1  ;;  %v593_v30 = vrot.slane %v586_v25, %v1263_v36 }
  0x22   : > { %v729_v33 = vrot.slane %v722_v28, %v1263_v36 }
  0x23   : > { %1023 = vmatpush3.bf16.msra.mxu0 %v1113_v48  ;;  %v601_v37 = vcombine.low %v593_v30, %v600_v31 }
  0x24   : > { %1043 = vmatpush3.bf16.msra.mxu1 %v1114_v51  ;;  %1048 = vmatprep.subr.bf16.mxu0 %v1139_v1  ;;  %v737_v38 = vcombine.low %v729_v33, %v736_v34  ;;  %v963_v51 = vld [vmem:[%s1393_s2] ss:$0 sm:$0xff] }
  0x25   : > { %1068 = vmatprep.subr.bf16.mxu1 %v1139_v1 }
  0x26   : > { %1025 = vmatmul.mubr.bf16.vlgmr.msra.gmra.mrb[0].mxu0 %v322_v58 }
  0x27   : > { %1045 = vmatmul.mubr.bf16.vlgmr.msra.gmra.mrb[0].mxu1 %v456_v56  ;;  %1049 = vmatpush3.bf16.msra.mxu0 %v1115_v57 }
  0x28   : > { %1069 = vmatpush3.bf16.msra.mxu1 %v1116_v59  ;;  %1050 = vmatprep.subr.bf16.mxu0 %v1139_v1 }
  0x29   : > { %1070 = vmatprep.subr.bf16.mxu1 %v1139_v1  ;;  %1064 = vmatprep.mubr.msk.bf16.mxu0 %vm1140_vm0, %v1139_v1 }
  0x2a   : > { %1084 = vmatprep.mubr.msk.bf16.mxu1 %vm1140_vm0, %v1139_v1 }
  0x2b   : > { %1051 = vmatpush3.bf16.msra.mxu0 %v1117_v60 }
  0x2c   : > { %1071 = vmatpush3.bf16.msra.mxu1 %v1118_v61  ;;  %1052 = vmatprep.subr.bf16.mxu0 %v1139_v1 }
  0x2d   : > { %1072 = vmatprep.subr.bf16.mxu1 %v1139_v1 }
  0x2f   : > { %1053 = vmatpush3.bf16.msra.mxu0 %v1119_v63 }
  0x30   : > { %1073 = vmatpush3.bf16.msra.mxu1 %v1120_v4  ;;  %1054 = vmatprep.subr.bf16.mxu0 %v1139_v1 }
  0x31   : > { %1074 = vmatprep.subr.bf16.mxu1 %v1139_v1 }
  0x33   : > { %1055 = vmatpush3.bf16.msra.mxu0 %v1121_v6 }
  0x34   : > { %1075 = vmatpush3.bf16.msra.mxu1 %v1122_v9  ;;  %1056 = vmatprep.subr.bf16.mxu0 %v1139_v1 }
  0x35   : > { %1076 = vmatprep.subr.bf16.mxu1 %v1139_v1 }
  0x37   : > { %1057 = vmatpush3.bf16.msra.mxu0 %v1123_v12 }
  0x38   : > { %1077 = vmatpush3.bf16.msra.mxu1 %v1124_v16  ;;  %1058 = vmatprep.subr.bf16.mxu0 %v1139_v1 }
  0x39   : > { %1078 = vmatprep.subr.bf16.mxu1 %v1139_v1 }
  0x3b   : > { %1059 = vmatpush3.bf16.msra.mxu0 %v1125_v19 }
  0x3c   : > { %1079 = vmatpush3.bf16.msra.mxu1 %v1126_v23  ;;  %1060 = vmatprep.subr.bf16.mxu0 %v1139_v1 }
  0x3d   : > { %1080 = vmatprep.subr.bf16.mxu1 %v1139_v1 }
  0x3f   : > { %1061 = vmatpush3.bf16.msra.mxu0 %v1127_v26 }
  0x40   : > { %1081 = vmatpush3.bf16.msra.mxu1 %v1128_v29  ;;  %1062 = vmatprep.subr.bf16.mxu0 %v1139_v1 }
  0x41   : > { %1082 = vmatprep.subr.bf16.mxu1 %v1139_v1 }
  0x43   : > { %1063 = vmatpush3.bf16.msra.mxu0 %v1129_v32 }
  0x44   : > { %1083 = vmatpush3.bf16.msra.mxu1 %v1130_v35 }
  0x46   : > { %1065 = vmatmul.mubr.bf16.vlgmr.msra.gmra.mrb[4].mxu0 %v601_v37 }
  0x47   : > { %1085 = vmatmul.mubr.bf16.vlgmr.msra.gmra.mrb[4].mxu1 %v737_v38 }
  0xf9   : > { %v406_v39 = vpop.f32.mrb[0].mxu0 }
  0xfa   : > { %v540_v40 = vpop.f32.mrb[0].mxu1  ;;  %v1026_v41 = vpop.f32.mrb[1].mxu0 }
  0xfb   : > { %v541_v42 = vadd.f32 %v540_v40, %v406_v39  ;;  %v1046_v36 = vpop.f32.mrb[1].mxu1  ;;  %v409_v43 = vpop.f32.mrb[2].mxu0 }
  0xfc   : > { %v543_v44 = vpop.f32.mrb[2].mxu1  ;;  %v1027_v45 = vpop.f32.mrb[3].mxu0 }
  0xfd   : > { %v544_v46 = vadd.f32 %v543_v44, %v409_v43  ;;  %v1047_v47 = vpop.f32.mrb[3].mxu1 }
 0x119   : > { %v685_v48 = vpop.f32.mrb[4].mxu0 }
 0x11a   : > { %v692_v49 = vadd.f32 %v685_v48, %v541_v42  ;;  %v821_v1 = vpop.f32.mrb[4].mxu1  ;;  %v1066_v50 = vpop.f32.mrb[5].mxu0 }
 0x11b   : > { %v1086_v52 = vpop.f32.mrb[5].mxu1  ;;  %v688_v53 = vpop.f32.mrb[6].mxu0 }
 0x11c   : > { %v828_v54 = vadd.f32 %v821_v1, %v692_v49  ;;  %v693_v55 = vadd.f32 %v688_v53, %v544_v46  ;;  %v824_v56 = vpop.f32.mrb[6].mxu1  ;;  %v1067_v57 = vpop.f32.mrb[7].mxu0 }
 0x11d   : > { %v1087_v58 = vpop.f32.mrb[7].mxu1 }
 0x11e   : > { %v837_v59 = vadd.f32 %v963_v51, %v828_v54  ;;  %v829_v60 = vadd.f32 %v824_v56, %v693_v55 }
 0x120   : > { %v839_v61 = vmax.f32 %v837_v59, 0.0  ;;  %v838_v62 = vadd.f32 %v963_v51, %v829_v60 }
 0x122   : > { %v970_v63 = vpack.c.bf16 %v839_v61, %v839_v61  ;;  %v840_v0 = vmax.f32 %v838_v62, 0.0 }
 0x124   : > { %850 = vst.msk [vmem:[%s170_s11] sm:$0xf] %vm849_vm3, %v970_v63  ;;  %v971_v3 = vpack.c.bf16 %v840_v0, %v840_v0 }
 0x126   : > { %v855_v4 = vsel %vm853_vm4, %v971_v3, %v854_v2 }
 0x127   : > { %856 = vst [vmem:[%s170_s11 + $0x4] sm:$0x1] %v855_v4 }
 0x128 PF: > { %s13_s12 = sadd.s32 1, %s1137_s12  }
 0x129   : > { %p10_p4 = scmp.ge.s32.totalorder %s13_s12, 4  }
 0x12b   :  { %12 = sbr.rel (!%p10_p4) target bundleno = 1 (0x1), region = 62 }

// kernel: dqn_forward.6
= control target key start
LH: loop header
LB: loop body
LE: loop exit
PB: predicated region body
PF: predicated region fallthrough
CT: control target
= control target key end

     0   :  { %s1232_s12 = smov 0   ;;  %s1437_s0 = inlined_call_operand.vmem [shape: bf16[2,3,3,64], index: 0, kind: input, shape index: {}]   ;;  %s1438_s1 = inlined_call_operand.vmem [shape: bf16[3,3,64,64], index: 1, kind: input, shape index: {}]   ;;  %s1439_s2 = inlined_call_operand.vmem [shape: f32[1,64], index: 2, kind: input, shape index: {}]   ;;  %s1440_s3 = inlined_call_operand.vmem [shape: bf16[2,1,64], index: 3, kind: output, shape index: {}]  }
   0x1 LB: > { %s947_s13 = sadd.s32 4294967295, %s1207_s12   ;;  %p951_p0 = scmp.ge.s32.totalorder %s1207_s12, 1  ;;  %s1207_s12 = sphi %s1232_s12, %s13_s12  }
   0x2   : > { %p137_p1 = scmp.lt.s32.totalorder %s1207_s12, 3 }
   0x4   : > { %p138_p2 = pnand %p951_p0, %p137_p1 }
   0x5   : > { %v1165_v0 = vld [vmem:[%s1438_s1 + $0x20] sm:$0xff] (!%p138_p2)   ;;  %v1209_v1 = vmov (!%p138_p2), 0.0   ;;  %v1167_v3 = vld [vmem:[%s1438_s1 + $0x28] sm:$0xff] (!%p138_p2)   ;;  %vm1210_vm0 = vmmov (!%p138_p2), 0   ;;  %p159_p3 = scmp.lt.s32.totalorder (!%p138_p2), %s947_s13, 1  ;;  %v247_v5 = vlaneseq (!%p138_p2)  ;;  %v1169_v6 = vld [vmem:[%s1438_s1 + $0x30] sm:$0xff] (!%p138_p2)  }
   0x6   : > { %141 = sbr.rel (%p138_p2) target bundleno = 308 (0x134), region = 32  ;;  %1045 = vmatprep.subr.bf16.mxu0 (!%p138_p2), %v1209_v1  ;;  %1057 = vmatprep.subr.bf16.mxu1 (!%p138_p2), %v1209_v1  ;;  %v1166_v2 = vld [vmem:[%s1438_s1] sm:$0xff] (!%p138_p2)   ;;  %v1168_v4 = vld [vmem:[%s1438_s1 + $0x8] sm:$0xff] (!%p138_p2)   ;;  %v1170_v7 = vld [vmem:[%s1438_s1 + $0x10] sm:$0xff] (!%p138_p2)   ;;  %v1211_v8 = vmov (!%p138_p2), 1983009808  }
   0x7   : > { %1046 = vmatpush3.bf16.msra.mxu0 (!%p138_p2), %v1165_v0  ;;  %1053 = vmatprep.mubr.msk.bf16.mxu0 (!%p138_p2), %vm1210_vm0, %v1209_v1  ;;  %v245_v9 = vunpack.c.l.s4 (!%p138_p2), %v1211_v8  ;;  %v248_v10 = vshrl.u32 (!%p138_p2), %v247_v5, 7  ;;  %v1171_v11 = vld [vmem:[%s1438_s1 + $0x38] sm:$0xff] (!%p138_p2)   ;;  %vm278_vm1 = vcmask (!%p138_p2), 523264   ;;  %v1174_v17 = vld [vmem:[%s1438_s1 + $0x60] sm:$0xff] (!%p138_p2)   ;;  %v1176_v20 = vld [vmem:[%s1438_s1 + $0x68] sm:$0xff] (!%p138_p2)   ;;  %vm894_vm2 = vcmask (!%p138_p2), 516096  }
   0x8   : > { %1058 = vmatpush3.bf16.msra.mxu1 (!%p138_p2), %v1166_v2  ;;  %1047 = vmatprep.subr.bf16.mxu0 (!%p138_p2), %v1209_v1  ;;  %v1172_v12 = vld [vmem:[%s1438_s1 + $0x18] sm:$0xff] (!%p138_p2)   ;;  %v1173_v18 = vld [vmem:[%s1438_s1 + $0x40] sm:$0xff] (!%p138_p2)   ;;  %v1175_v21 = vld [vmem:[%s1438_s1 + $0x48] sm:$0xff] (!%p138_p2)   ;;  %vm895_vm3 = vsmask.f32 (!%p138_p2), 256 }
   0x9   : > { %1059 = vmatprep.subr.bf16.mxu1 (!%p138_p2), %v1209_v1  ;;  %1065 = vmatprep.mubr.msk.bf16.mxu1 (!%p138_p2), %vm1210_vm0, %v1209_v1  ;;  %v246_v13 = vunpack.c.0.s8 (!%p138_p2), %v245_v9  ;;  %v1178_v22 = vld [vmem:[%s1438_s1 + $0x70] sm:$0xff] (!%p138_p2)   ;;  %v1180_v24 = vld [vmem:[%s1438_s1 + $0x78] sm:$0xff] (!%p138_p2)   ;;  %v1182_v27 = vld [vmem:[%s1438_s1 + $0xa0] sm:$0xff] (!%p138_p2)  }
   0xa   : > { %v1177_v23 = vld [vmem:[%s1438_s1 + $0x50] sm:$0xff] (!%p138_p2)   ;;  %v1179_v25 = vld [vmem:[%s1438_s1 + $0x58] sm:$0xff] (!%p138_p2)   ;;  %v1181_v29 = vld [vmem:[%s1438_s1 + $0x80] sm:$0xff] (!%p138_p2)  }
   0xb   : > { %1048 = vmatpush3.bf16.msra.mxu0 (!%p138_p2), %v1167_v3  ;;  %v1285_v15 = vsub.s32 (!%p138_p2), %v246_v13, %v248_v10  ;;  %v1184_v30 = vld [vmem:[%s1438_s1 + $0xa8] sm:$0xff] (!%p138_p2)   ;;  %v1186_v32 = vld [vmem:[%s1438_s1 + $0xb0] sm:$0xff] (!%p138_p2)   ;;  %v1188_v35 = vld [vmem:[%s1438_s1 + $0xb8] sm:$0xff] (!%p138_p2)  }
   0xc   : > { %1060 = vmatpush3.bf16.msra.mxu1 (!%p138_p2), %v1168_v4  ;;  %1049 = vmatprep.subr.bf16.mxu0 (!%p138_p2), %v1209_v1  ;;  %v1183_v31 = vld [vmem:[%s1438_s1 + $0x88] sm:$0xff] (!%p138_p2)   ;;  %v1185_v33 = vld [vmem:[%s1438_s1 + $0x90] sm:$0xff] (!%p138_p2)   ;;  %v1187_v36 = vld [vmem:[%s1438_s1 + $0x98] sm:$0xff] (!%p138_p2)  }
   0xd   : > { %s1442_s13 = smov (!%p159_p3, %s947_s13), 1  ;;  %1061 = vmatprep.subr.bf16.mxu1 %v1209_v1  ;;  %v1190_v39 = vld [vmem:[%s1438_s1 + $0xe0] sm:$0xff]   ;;  %v1192_v41 = vld [vmem:[%s1438_s1 + $0xe8] sm:$0xff]   ;;  %v1194_v43 = vld [vmem:[%s1438_s1 + $0xf0] sm:$0xff]  }
   0xe   : > { %s1153_s24 = smul.u32 6, %s1442_s13  ;;  %v1189_v40 = vld [vmem:[%s1438_s1 + $0xc0] sm:$0xff]   ;;  %v1191_v42 = vld [vmem:[%s1438_s1 + $0xc8] sm:$0xff]   ;;  %v1193_v45 = vld [vmem:[%s1438_s1 + $0xd0] sm:$0xff]   ;;  %s166_s20 = scalar_lea.vmem %s1440_s3, %s1442_s13 }
   0xf   : > { %1050 = vmatpush3.bf16.msra.mxu0 %v1169_v6  ;;  %v1196_v47 = vld [vmem:[%s1438_s1 + $0xf8] sm:$0xff]   ;;  %v1197_v50 = vld [vmem:[%s1438_s1 + $0x100] sm:$0xff]   ;;  %v1198_v51 = vld [vmem:[%s1438_s1 + $0x108] sm:$0xff]  }
  0x10   : > { %s1274_s29 = scalar_lea.vmem %s1437_s0, %s1153_s24  ;;  %1062 = vmatpush3.bf16.msra.mxu1 %v1170_v7  ;;  %1051 = vmatprep.subr.bf16.mxu0 %v1209_v1  ;;  %v1195_v48 = vld [vmem:[%s1438_s1 + $0xd8] sm:$0xff]   ;;  %v1199_v52 = vld [vmem:[%s1438_s1 + $0x110] sm:$0xff]   ;;  %vm896_vm4 = vmand %vm894_vm2, %vm895_vm3 }
  0x11   : > { %1063 = vmatprep.subr.bf16.mxu1 %v1209_v1  ;;  %v168_v14 = vld [vmem:[%s1274_s29] sm:$0x3]  ;;  %v169_v28 = vld [vmem:[%s1274_s29 + $0x2] sm:$0x3]  ;;  %v170_v44 = vld [vmem:[%s1274_s29 + $0x4] sm:$0x3] }
  0x12   : > { %v250_v16 = vrot.slane %v168_v14, %v1285_v15  ;;  %v533_v34 = vrot.slane %v169_v28, %v1285_v15  ;;  %v749_v46 = vrot.slane %v170_v44, %v1285_v15  ;;  %v1200_v53 = vld [vmem:[%s1438_s1 + $0x118] sm:$0xff]  }
  0x13   : > { %1052 = vmatpush3.bf16.msra.mxu0 %v1171_v11 }
  0x14   : > { %1064 = vmatpush3.bf16.msra.mxu1 %v1172_v12  ;;  %1069 = vmatprep.subr.bf16.mxu0 %v1209_v1  ;;  %v252_v19 = vshrl.u32 %v250_v16, 16  ;;  %v389_v26 = vrot.slane %v250_v16, 1  ;;  %v605_v37 = vrot.slane %v533_v34, 1  ;;  %v535_v38 = vshrl.u32 %v533_v34, 16 }
  0x15   : > { %1081 = vmatprep.subr.bf16.mxu1 %v1209_v1  ;;  %v751_v49 = vshrl.u32 %v749_v46, 16  ;;  %v821_v54 = vrot.slane %v749_v46, 1 }
  0x16   : > { %1054 = vmatmul.mubr.msk.bf16.vlgmr.msra.gmra.mrb[0].mxu0 %vm278_vm1, %v252_v19 }
  0x17   : > { %1066 = vmatmul.mubr.msk.bf16.vlgmr.msra.gmra.mrb[0].mxu1 %vm278_vm1, %v168_v14  ;;  %1070 = vmatpush3.bf16.msra.mxu0 %v1173_v18 }
  0x18   : > { %1082 = vmatpush3.bf16.msra.mxu1 %v1174_v17  ;;  %1071 = vmatprep.subr.bf16.mxu0 %v1209_v1 }
  0x19   : > { %1083 = vmatprep.subr.bf16.mxu1 %v1209_v1  ;;  %1077 = vmatprep.mubr.msk.bf16.mxu0 %vm1210_vm0, %v1209_v1 }
  0x1a   : > { %1089 = vmatprep.mubr.msk.bf16.mxu1 %vm1210_vm0, %v1209_v1 }
  0x1b   : > { %1072 = vmatpush3.bf16.msra.mxu0 %v1175_v21 }
  0x1c   : > { %1084 = vmatpush3.bf16.msra.mxu1 %v1176_v20  ;;  %1073 = vmatprep.subr.bf16.mxu0 %v1209_v1 }
  0x1d   : > { %1085 = vmatprep.subr.bf16.mxu1 %v1209_v1 }
  0x1f   : > { %1074 = vmatpush3.bf16.msra.mxu0 %v1177_v23 }
  0x20   : > { %1086 = vmatpush3.bf16.msra.mxu1 %v1178_v22  ;;  %1075 = vmatprep.subr.bf16.mxu0 %v1209_v1 }
  0x21   : > { %1087 = vmatprep.subr.bf16.mxu1 %v1209_v1 }
  0x23   : > { %1076 = vmatpush3.bf16.msra.mxu0 %v1179_v25 }
  0x24   : > { %1088 = vmatpush3.bf16.msra.mxu1 %v1180_v24  ;;  %1093 = vmatprep.subr.bf16.mxu0 %v1209_v1 }
  0x25   : > { %1105 = vmatprep.subr.bf16.mxu1 %v1209_v1 }
  0x26   : > { %1078 = vmatmul.mubr.msk.bf16.vlgmr.msra.gmra.mrb[4].mxu0 %vm278_vm1, %v389_v26 }
  0x27   : > { %1090 = vmatmul.mubr.msk.bf16.vlgmr.msra.gmra.mrb[4].mxu1 %vm278_vm1, %v169_v28  ;;  %1094 = vmatpush3.bf16.msra.mxu0 %v1181_v29 }
  0x28   : > { %1106 = vmatpush3.bf16.msra.mxu1 %v1182_v27  ;;  %1095 = vmatprep.subr.bf16.mxu0 %v1209_v1 }
  0x29   : > { %1107 = vmatprep.subr.bf16.mxu1 %v1209_v1  ;;  %1101 = vmatprep.mubr.msk.bf16.mxu0 %vm1210_vm0, %v1209_v1 }
  0x2a   : > { %1113 = vmatprep.mubr.msk.bf16.mxu1 %vm1210_vm0, %v1209_v1 }
  0x2b   : > { %1096 = vmatpush3.bf16.msra.mxu0 %v1183_v31  ;;  %v890_v31 = vld [vmem:[%s1439_s2] sm:$0x1] }
  0x2c   : > { %1108 = vmatpush3.bf16.msra.mxu1 %v1184_v30  ;;  %1097 = vmatprep.subr.bf16.mxu0 %v1209_v1 }
  0x2d   : > { %1109 = vmatprep.subr.bf16.mxu1 %v1209_v1 }
  0x2f   : > { %1098 = vmatpush3.bf16.msra.mxu0 %v1185_v33 }
  0x30   : > { %1110 = vmatpush3.bf16.msra.mxu1 %v1186_v32  ;;  %1099 = vmatprep.subr.bf16.mxu0 %v1209_v1 }
  0x31   : > { %1111 = vmatprep.subr.bf16.mxu1 %v1209_v1 }
  0x33   : > { %1100 = vmatpush3.bf16.msra.mxu0 %v1187_v36 }
  0x34   : > { %1112 = vmatpush3.bf16.msra.mxu1 %v1188_v35  ;;  %1117 = vmatprep.subr.bf16.mxu0 %v1209_v1 }
  0x35   : > { %1129 = vmatprep.subr.bf16.mxu1 %v1209_v1 }
  0x36   : > { %1102 = vmatmul.mubr.msk.bf16.vlgmr.msra.gmra.mrb[8].mxu0 %vm278_vm1, %v535_v38  ;;  %v897_v38 = vld [vmem:[%s166_s20] sm:$0x1] }
  0x37   : > { %1114 = vmatmul.mubr.msk.bf16.vlgmr.msra.gmra.mrb[8].mxu1 %vm278_vm1, %v605_v37  ;;  %1118 = vmatpush3.bf16.msra.mxu0 %v1189_v40 }
  0x38   : > { %1130 = vmatpush3.bf16.msra.mxu1 %v1190_v39  ;;  %1119 = vmatprep.subr.bf16.mxu0 %v1209_v1 }
  0x39   : > { %1131 = vmatprep.subr.bf16.mxu1 %v1209_v1  ;;  %1125 = vmatprep.mubr.msk.bf16.mxu0 %vm1210_vm0, %v1209_v1 }
  0x3a   : > { %1137 = vmatprep.mubr.msk.bf16.mxu1 %vm1210_vm0, %v1209_v1 }
  0x3b   : > { %1120 = vmatpush3.bf16.msra.mxu0 %v1191_v42 }
  0x3c   : > { %1132 = vmatpush3.bf16.msra.mxu1 %v1192_v41  ;;  %1121 = vmatprep.subr.bf16.mxu0 %v1209_v1 }
  0x3d   : > { %1133 = vmatprep.subr.bf16.mxu1 %v1209_v1 }
  0x3f   : > { %1122 = vmatpush3.bf16.msra.mxu0 %v1193_v45 }
  0x40   : > { %1134 = vmatpush3.bf16.msra.mxu1 %v1194_v43  ;;  %1123 = vmatprep.subr.bf16.mxu0 %v1209_v1 }
  0x41   : > { %1135 = vmatprep.subr.bf16.mxu1 %v1209_v1 }
  0x43   : > { %1124 = vmatpush3.bf16.msra.mxu0 %v1195_v48 }
  0x44   : > { %1136 = vmatpush3.bf16.msra.mxu1 %v1196_v47  ;;  %1141 = vmatprep.subr.bf16.mxu0 %v1209_v1 }
  0x46   : > { %1126 = vmatmul.mubr.msk.bf16.vlgmr.msra.gmra.mrb[12].mxu0 %vm278_vm1, %v170_v44 }
  0x47   : > { %1138 = vmatmul.mubr.msk.bf16.vlgmr.msra.gmra.mrb[12].mxu1 %vm278_vm1, %v751_v49  ;;  %1142 = vmatpush3.bf16.msra.mxu0 %v1197_v50 }
  0x48   : > { %1149 = vmatprep.mubr.msk.bf16.mxu0 %vm1210_vm0, %v1209_v1  ;;  %1143 = vmatprep.subr.bf16.mxu0 %v1209_v1 }
  0x4b   : > { %1144 = vmatpush3.bf16.msra.mxu0 %v1198_v51 }
  0x4c   : > { %1145 = vmatprep.subr.bf16.mxu0 %v1209_v1 }
  0x4f   : > { %1146 = vmatpush3.bf16.msra.mxu0 %v1199_v52 }
  0x50   : > { %1147 = vmatprep.subr.bf16.mxu0 %v1209_v1 }
  0x53   : > { %1148 = vmatpush3.bf16.msra.mxu0 %v1200_v53 }
  0x56   : > { %1150 = vmatmul.mubr.msk.bf16.vlgmr.msra.gmra.mrb[16].mxu0 %vm278_vm1, %v821_v54 }
  0xe9   : > { %v316_v56 = vpop.f32.mrb[0].mxu0 }
  0xea   : > { %v383_v55 = vpop.f32.mrb[0].mxu1  ;;  %v1055_v58 = vpop.f32.mrb[1].mxu0 }
  0xeb   : > { %v1067_v57 = vpop.f32.mrb[1].mxu1  ;;  %v384_v59 = vadd.f32 %v383_v55, %v316_v56  ;;  %v319_v61 = vpop.f32.mrb[2].mxu0 }
  0xec   : > { %v386_v60 = vpop.f32.mrb[2].mxu1  ;;  %v1056_v63 = vpop.f32.mrb[3].mxu0 }
  0xed   : > { %v1068_v62 = vpop.f32.mrb[3].mxu1 }
  0xf9   : > { %v451_v2 = vpop.f32.mrb[4].mxu0 }
  0xfa   : > { %v519_v0 = vpop.f32.mrb[4].mxu1  ;;  %v457_v4 = vadd.f32 %v451_v2, %v384_v59  ;;  %v1079_v5 = vpop.f32.mrb[5].mxu0 }
  0xfb   : > { %v1091_v3 = vpop.f32.mrb[5].mxu1  ;;  %v454_v1 = vpop.f32.mrb[6].mxu0 }
  0xfc   : > { %v522_v6 = vpop.f32.mrb[6].mxu1  ;;  %v525_v8 = vadd.f32 %v519_v0, %v457_v4  ;;  %v1080_v9 = vpop.f32.mrb[7].mxu0 }
  0xfd   : > { %v1092_v7 = vpop.f32.mrb[7].mxu1 }
 0x109   : > { %v598_v11 = vpop.f32.mrb[8].mxu0 }
 0x10a   : > { %v667_v10 = vpop.f32.mrb[8].mxu1  ;;  %v604_v13 = vadd.f32 %v598_v11, %v525_v8  ;;  %v1103_v14 = vpop.f32.mrb[9].mxu0 }
 0x10b   : > { %v1115_v12 = vpop.f32.mrb[9].mxu1  ;;  %v601_v16 = vpop.f32.mrb[10].mxu0 }
 0x10c   : > { %v670_v15 = vpop.f32.mrb[10].mxu1  ;;  %v673_v18 = vadd.f32 %v667_v10, %v604_v13  ;;  %v1104_v19 = vpop.f32.mrb[11].mxu0 }
 0x10d   : > { %v1116_v17 = vpop.f32.mrb[11].mxu1 }
 0x119   : > { %v735_v21 = vpop.f32.mrb[12].mxu0 }
 0x11a   : > { %v814_v20 = vpop.f32.mrb[12].mxu1  ;;  %v741_v23 = vadd.f32 %v735_v21, %v673_v18  ;;  %v1127_v24 = vpop.f32.mrb[13].mxu0 }
 0x11b   : > { %v1139_v22 = vpop.f32.mrb[13].mxu1  ;;  %v738_v26 = vpop.f32.mrb[14].mxu0 }
 0x11c   : > { %v817_v25 = vpop.f32.mrb[14].mxu1  ;;  %v820_v28 = vadd.f32 %v814_v20, %v741_v23  ;;  %v1128_v29 = vpop.f32.mrb[15].mxu0 }
 0x11d   : > { %v1140_v27 = vpop.f32.mrb[15].mxu1 }
 0x129   : > { %v883_v30 = vpop.f32.mrb[16].mxu0 }
 0x12a   : > { %v889_v32 = vadd.f32 %v883_v30, %v820_v28  ;;  %v1151_v33 = vpop.f32.mrb[17].mxu0 }
 0x12b   : > { %v886_v34 = vpop.f32.mrb[18].mxu0 }
 0x12c   : > { %v891_v35 = vadd.f32 %v890_v31, %v889_v32  ;;  %v1152_v36 = vpop.f32.mrb[19].mxu0 }
 0x12e   : > { %v892_v37 = vmax.f32 %v891_v35, 0.0 }
 0x130   : > { %v893_v39 = vpack.c.bf16 %v892_v37, %v892_v37 }
 0x132   : > { %v898_v40 = vsel %vm896_vm4, %v893_v39, %v897_v38 }
 0x133   : > { %899 = vst [vmem:[%s166_s20] sm:$0x1] %v898_v40 }
 0x134 PF: > { %s13_s12 = sadd.s32 1, %s1207_s12  }
 0x135   : > { %p10_p4 = scmp.ge.s32.totalorder %s13_s12, 4  }
 0x137   :  { %12 = sbr.rel (!%p10_p4) target bundleno = 1 (0x1), region = 62 }

// kernel: dqn_forward.7
= control target key start
LH: loop header
LB: loop body
LE: loop exit
PB: predicated region body
PF: predicated region fallthrough
CT: control target
= control target key end

     0   :  { %v771_v2 = vmov 0   ;;  %vm141_vm0 = vcmask 523264   ;;  %s968_s0 = inlined_call_operand.vmem [shape: bf16[2,64], index: 0, kind: input, shape index: {}]   ;;  %s969_s1 = inlined_call_operand.vmem [shape: bf16[64,512], index: 1, kind: input, shape index: {}]   ;;  %s970_s2 = inlined_call_operand.vmem [shape: f32[1,512], index: 2, kind: input, shape index: {}]   ;;  %s971_s3 = inlined_call_operand.vmem [shape: bf16[512,6], index: 3, kind: input, shape index: {}]   ;;  %s972_s4 = inlined_call_operand.vmem [shape: f32[1,6], index: 4, kind: input, shape index: {}]   ;;  %s973_s5 = inlined_call_operand.hbm [shape: f32[2,6], index: 5, kind: output, shape index: {}]  }
   0x1   :  { %v691_v0 = vld [vmem:[%s969_s1 + $0x4] ss:$16 sps:$4 sm:$0xff]   ;;  %v693_v1 = vld [vmem:[%s969_s1 + $0xc] ss:$16 sps:$4 sm:$0xff]   ;;  %177 = vmatprep.mubr.bf16.mxu0 %v771_v2  ;;  %218 = vmatprep.mubr.bf16.mxu1 %v771_v2  ;;  %v695_v3 = vld [vmem:[%s969_s1] ss:$16 sps:$4 sm:$0xff]  }
   0x2   :  { %145 = vmatprep.subr.bf16.mxu0 %v691_v0  ;;  %v696_v4 = vld [vmem:[%s969_s1 + $0x8] ss:$16 sps:$4 sm:$0xff]   ;;  %186 = vmatprep.subr.bf16.mxu1 %v693_v1  ;;  %v697_v5 = vld [vmem:[%s969_s1 + $0x24] ss:$16 sps:$4 sm:$0xff]   ;;  %v699_v6 = vld [vmem:[%s969_s1 + $0x2c] ss:$16 sps:$4 sm:$0xff]  }
   0x3   :  { %146 = vmatpush1.bf16.msra.mxu0 %v695_v3  ;;  %187 = vmatpush1.bf16.msra.mxu1 %v696_v4  ;;  %v701_v7 = vld [vmem:[%s969_s1 + $0x20] ss:$16 sps:$4 sm:$0xff]   ;;  %v702_v8 = vld [vmem:[%s969_s1 + $0x28] ss:$16 sps:$4 sm:$0xff]   ;;  %v703_v9 = vld [vmem:[%s969_s1 + $0x44] ss:$16 sps:$4 sm:$0xff]  }
   0x4   :  { %147 = vmatprep.subr.bf16.mxu0 %v697_v5  ;;  %188 = vmatprep.subr.bf16.mxu1 %v699_v6  ;;  %v705_v10 = vld [vmem:[%s969_s1 + $0x4c] ss:$16 sps:$4 sm:$0xff]   ;;  %v707_v11 = vld [vmem:[%s969_s1 + $0x40] ss:$16 sps:$4 sm:$0xff]   ;;  %v708_v12 = vld [vmem:[%s969_s1 + $0x48] ss:$16 sps:$4 sm:$0xff]  }
   0x5   :  { %v709_v13 = vld [vmem:[%s969_s1 + $0x64] ss:$16 sps:$4 sm:$0xff]   ;;  %v711_v14 = vld [vmem:[%s969_s1 + $0x6c] ss:$16 sps:$4 sm:$0xff]   ;;  %v713_v15 = vld [vmem:[%s969_s1 + $0x60] ss:$16 sps:$4 sm:$0xff]  }
   0x6   :  { %v714_v16 = vld [vmem:[%s969_s1 + $0x68] ss:$16 sps:$4 sm:$0xff]   ;;  %v715_v17 = vld [vmem:[%s971_s3 + $0x40] sm:$0xff]   ;;  %v723_v26 = vld [vmem:[%s971_s3 + $0x50] sm:$0xff]  }
   0x7   :  { %148 = vmatpush1.bf16.msra.mxu0 %v701_v7  ;;  %189 = vmatpush1.bf16.msra.mxu1 %v702_v8  ;;  %v716_v18 = vld [vmem:[%s971_s3 + $0xc0] sm:$0xff]   ;;  %v719_v22 = vld [vmem:[%s971_s3 + $0x48] sm:$0xff]   ;;  %v724_v27 = vld [vmem:[%s971_s3 + $0xd0] sm:$0xff]  }
   0x8   :  { %149 = vmatprep.subr.bf16.mxu0 %v703_v9  ;;  %190 = vmatprep.subr.bf16.mxu1 %v705_v10  ;;  %v22_v19 = vld [vmem:[%s968_s0] sm:$0x1]  ;;  %v720_v23 = vld [vmem:[%s971_s3 + $0xc8] sm:$0xff]   ;;  %v725_v28 = vld [vmem:[%s971_s3 + $0x10] sm:$0xff]  }
   0x9   :  { %v717_v20 = vld [vmem:[%s971_s3] sm:$0xff]   ;;  %v721_v24 = vld [vmem:[%s971_s3 + $0x8] sm:$0xff]   ;;  %v726_v29 = vld [vmem:[%s971_s3 + $0x90] sm:$0xff]  }
   0xa   :  { %v718_v21 = vld [vmem:[%s971_s3 + $0x80] sm:$0xff]   ;;  %v722_v25 = vld [vmem:[%s971_s3 + $0x88] sm:$0xff]   ;;  %v727_v30 = vld [vmem:[%s971_s3 + $0x58] sm:$0xff]  }
   0xb   :  { %150 = vmatpush1.bf16.msra.mxu0 %v707_v11  ;;  %191 = vmatpush1.bf16.msra.mxu1 %v708_v12  ;;  %v728_v31 = vld [vmem:[%s971_s3 + $0xd8] sm:$0xff]   ;;  %v731_v34 = vld [vmem:[%s971_s3 + $0x60] sm:$0xff]   ;;  %v735_v38 = vld [vmem:[%s971_s3 + $0x68] sm:$0xff]  }
   0xc   :  { %151 = vmatprep.subr.bf16.mxu0 %v709_v13  ;;  %192 = vmatprep.subr.bf16.mxu1 %v711_v14  ;;  %v729_v32 = vld [vmem:[%s971_s3 + $0x18] sm:$0xff]   ;;  %v732_v35 = vld [vmem:[%s971_s3 + $0xe0] sm:$0xff]   ;;  %v736_v39 = vld [vmem:[%s971_s3 + $0xe8] sm:$0xff]  }
   0xd   :  { %v730_v33 = vld [vmem:[%s971_s3 + $0x98] sm:$0xff]   ;;  %v733_v36 = vld [vmem:[%s971_s3 + $0x20] sm:$0xff]   ;;  %v737_v40 = vld [vmem:[%s971_s3 + $0x28] sm:$0xff]  }
   0xe   :  { %v734_v37 = vld [vmem:[%s971_s3 + $0xa0] sm:$0xff]   ;;  %v738_v41 = vld [vmem:[%s971_s3 + $0xa8] sm:$0xff]  }
   0xf   :  { %152 = vmatpush1.bf16.msra.mxu0 %v713_v15  ;;  %193 = vmatpush1.bf16.msra.mxu1 %v714_v16 }
  0x10   :  { %645 = vmatprep.subr.bf16.mxu0 %v715_v17  ;;  %667 = vmatprep.subr.bf16.mxu1 %v716_v18 }
  0x12   :  { %610 = vmatmul.mubr.msk.bf16.vlgmr.msra.gmra.mrb[0].mxu0 %vm141_vm0, %v22_v19  ;;  %611 = vmatmul.mubr.msk.bf16.vlgmr.msra.gmra.mrb[0].mxu1 %vm141_vm0, %v22_v19 }
  0x13   :  { %646 = vmatpush3.bf16.msra.mxu0 %v717_v20  ;;  %668 = vmatpush3.bf16.msra.mxu1 %v718_v21 }
  0x14   :  { %647 = vmatprep.subr.bf16.mxu0 %v719_v22  ;;  %669 = vmatprep.subr.bf16.mxu1 %v720_v23 }
  0x17   :  { %648 = vmatpush3.bf16.msra.mxu0 %v721_v24  ;;  %670 = vmatpush3.bf16.msra.mxu1 %v722_v25 }
  0x18   :  { %649 = vmatprep.subr.bf16.mxu0 %v723_v26  ;;  %671 = vmatprep.subr.bf16.mxu1 %v724_v27 }
  0x1b   :  { %650 = vmatpush3.bf16.msra.mxu0 %v725_v28  ;;  %672 = vmatpush3.bf16.msra.mxu1 %v726_v29 }
  0x1c   :  { %651 = vmatprep.subr.bf16.mxu0 %v727_v30  ;;  %673 = vmatprep.subr.bf16.mxu1 %v728_v31 }
  0x1f   :  { %652 = vmatpush3.bf16.msra.mxu0 %v729_v32  ;;  %674 = vmatpush3.bf16.msra.mxu1 %v730_v33 }
  0x20   :  { %653 = vmatprep.subr.bf16.mxu0 %v731_v34  ;;  %675 = vmatprep.subr.bf16.mxu1 %v732_v35 }
  0x23   :  { %654 = vmatpush3.bf16.msra.mxu0 %v733_v36  ;;  %676 = vmatpush3.bf16.msra.mxu1 %v734_v37 }
  0x24   :  { %655 = vmatprep.subr.bf16.mxu0 %v735_v38  ;;  %677 = vmatprep.subr.bf16.mxu1 %v736_v39 }
  0x27   :  { %656 = vmatpush3.bf16.msra.mxu0 %v737_v40  ;;  %678 = vmatpush3.bf16.msra.mxu1 %v738_v41 }
  0x28   :  { %10 = vsyncpa [#allocation3], 0  ;;  %v739_v42 = vld [vmem:[%s971_s3 + $0x70] sm:$0xff]   ;;  %v743_v46 = vld [vmem:[%s971_s3 + $0x78] sm:$0xff]   ;;  %v41_v50 = vlaneseq  ;;  %s772_s0 = smov [#allocation2]   ;;  %vm578_vm1 = vcmask 41984  }
  0x29   :  { %v740_v43 = vld [vmem:[%s971_s3 + $0xf0] sm:$0xff]   ;;  %657 = vmatprep.subr.bf16.mxu0 %v739_v42  ;;  %v744_v47 = vld [vmem:[%s971_s3 + $0xf8] sm:$0xff]   ;;  %v39_v54 = vld [vmem:[%s970_s2] sm:$0xf]  ;;  %s586_s13 = sshll.u32 %s772_s0, 4  ;;  %s587_s13 = int_to_ptr.vmem [resolvable:$true] %s586_s13 }
  0x2a   :  { %v741_v44 = vld [vmem:[%s971_s3 + $0x30] sm:$0xff]   ;;  %679 = vmatprep.subr.bf16.mxu1 %v740_v43  ;;  %v745_v48 = vld [vmem:[%s971_s3 + $0x38] sm:$0xff]   ;;  %v42_v51 = vshrl.u32 %v41_v50, 7  ;;  %v612_v19 = vld [vmem:[%s972_s4] ss:$0 sm:$0xff]  ;;  %s747_s14 = scalar_lea.vmem %s587_s13, 32  ;;  %p752_p1 = scmp.lt.s32.totalorder %s587_s13, %s587_s13 }
  0x2b   :  { %v742_v45 = vld [vmem:[%s971_s3 + $0xb0] sm:$0xff]   ;;  %658 = vmatpush3.bf16.msra.mxu0 %v741_v44  ;;  %v746_v49 = vld [vmem:[%s971_s3 + $0xb8] sm:$0xff]   ;;  %p748_p0 = scmp.ne.s32.totalorder %s587_s13, %s747_s14  ;;  %p753_p2 = scmp.lt.s32.totalorder %s747_s14, %s747_s14 }
  0x2c   :  { %680 = vmatpush3.bf16.msra.mxu1 %v742_v45  ;;  %659 = vmatprep.subr.bf16.mxu0 %v743_v46  ;;  %v43_v52 = vsub.s32 0, %v42_v51  ;;  %v51_v53 = vsub.s32 2, %v42_v51  ;;  %v47_v55 = vsub.s32 1, %v42_v51  ;;  %v55_v56 = vsub.s32 3, %v42_v51 }
  0x2d   :  { %681 = vmatprep.subr.bf16.mxu1 %v744_v47  ;;  %p754_p3 = por %p753_p2, %p752_p1 }
  0x2e   :  { %v44_v57 = vrot.slane %v39_v54, %v43_v52  ;;  %v52_v58 = vrot.slane %v39_v54, %v51_v53  ;;  %v48_v59 = vrot.slane %v39_v54, %v47_v55  ;;  %v56_v60 = vrot.slane %v39_v54, %v55_v56 }
  0x2f   :  { %660 = vmatpush3.bf16.msra.mxu0 %v745_v48  ;;  %p755_p4 = pnand %p754_p3, %p748_p0 }
  0x30   :  { %682 = vmatpush3.bf16.msra.mxu1 %v746_v49 }
  0xe5   :  { %v179_v61 = vpop.f32.mrb[0].mxu0  ;;  %v220_v62 = vpop.f32.mrb[0].mxu1 }
  0xe6   :  { %v180_v63 = vadd.f32 %v179_v61, %v44_v57  ;;  %v221_v0 = vadd.f32 %v220_v62, %v52_v58  ;;  %v181_v1 = vpop.f32.mrb[1].mxu0  ;;  %v222_v2 = vpop.f32.mrb[1].mxu1 }
  0xe7   :  { %v182_v3 = vadd.f32 %v181_v1, %v48_v59  ;;  %v223_v4 = vadd.f32 %v222_v2, %v56_v60  ;;  %v183_v5 = vpop.f32.mrb[2].mxu0  ;;  %v224_v6 = vpop.f32.mrb[2].mxu1 }
  0xe8   :  { %v227_v7 = vmax.f32 %v180_v63, 0.0  ;;  %v229_v8 = vmax.f32 %v221_v0, 0.0  ;;  %v184_v9 = vpop.f32.mrb[3].mxu0  ;;  %v225_v10 = vpop.f32.mrb[3].mxu1 }
  0xe9   :  { %v228_v11 = vmax.f32 %v182_v3, 0.0  ;;  %v230_v12 = vmax.f32 %v223_v4, 0.0 }
  0xea   :  { %v233_v13 = vpack.c.bf16 %v229_v8, %v229_v8  ;;  %v231_v16 = vpack.c.bf16 %v227_v7, %v227_v7 }
  0xeb   :  { %v232_v14 = vpack.c.bf16 %v228_v11, %v228_v11  ;;  %v234_v15 = vpack.c.bf16 %v230_v12, %v230_v12 }
  0xed   :  { %530 = vmatprep.mubr.bf16.mxu0 %v232_v14  ;;  %570 = vmatprep.mubr.bf16.mxu1 %v234_v15 }
  0xee   :  { %531 = vmatmul.mubr.bf16.vlgmr.msra.gmra.mrb[4].mxu0 %v231_v16  ;;  %571 = vmatmul.mubr.bf16.vlgmr.msra.gmra.mrb[4].mxu1 %v233_v13 }
 0x1c1   :  { %v661_v17 = vpop.f32.mrb[4].mxu0  ;;  %v683_v18 = vpop.f32.mrb[4].mxu1 }
 0x1c2   :  { %v662_v20 = vpop.f32.mrb[5].mxu0  ;;  %v684_v21 = vpop.f32.mrb[5].mxu1 }
 0x1c3   :  { %v663_v22 = vadd.f32 %v662_v20, %v661_v17  ;;  %v685_v23 = vadd.f32 %v684_v21, %v683_v18  ;;  %v664_v24 = vpop.f32.mrb[6].mxu0  ;;  %v686_v25 = vpop.f32.mrb[6].mxu1 }
 0x1c4   :  { %v665_v26 = vpop.f32.mrb[7].mxu0  ;;  %v687_v27 = vpop.f32.mrb[7].mxu1 }
 0x1c5   :  { %v533_v28 = vadd.f32 %v663_v22, %v612_v19 }
 0x1c7   :  { %v573_v29 = vadd.f32 %v685_v23, %v533_v28 }
 0x1c9   :  { %579 = vst.msk [vmem:[#allocation2] sm:$0x3] %vm578_vm1, %v573_v29 }
 0x1ca   :  { %758 = shalt.err (!%p755_p4)
}
 0x1cb   :  { %s759_s16 = scalar_lea.hbm %s973_s5, 32 }
 0x1cc   :  { %p760_p5 = scmp.ne.s32.totalorder %s973_s5, %s759_s16  ;;  %p763_p6 = scmp.lt.u32.totalorder %s759_s16, %s973_s5 }
 0x1ce   :  { %p765_p7 = pnand %p763_p6, %p760_p5 }
 0x1d0   :  { %768 = shalt.err (!%p765_p7)
}
 0x1d1   :  { %589 = dma.vmem_to_hbm [thread:$0]  %s587_s13, 32, %s973_s5, [#allocation3]  }
 0x1d2   :  { %769 = dma.done.wait [#allocation3], 32  }
 0x1d3   :  { %770 = vsyncadd [#allocation3], 4294967264 }
 0x1d4   :  { %593 = vsyncpa [#allocation3], 1 }

</bundles_post_ra>
